<compile_context>
chip_gen: v7x
topology: tpu7x:2x2x1
jax: 0.10.0
libtpu: 0.0.40
codegen_flags: <defaults>
</compile_context>

<pallas_src>
import functools

import jax
import jax.numpy as jnp
from jax.experimental import pallas as pl
from jax.experimental.pallas import tpu as pltpu


# ---------------------------------------------------------------------------
# Shared in-kernel gate math
# ---------------------------------------------------------------------------
def _gate_math(state, inp, cons, w_ref, b_ref, E):
    """Fused 3-gate LSTM_Unit math. Returns (out_hidden, out_cell) in f32.

    state/inp/cons: (TB, E) values
    w_ref:          (2E, 3E) fused [f|i|c] weight ref (bf16)
    b_ref:          (1, 3E)  fused bias ref (f32)
    """
    w_dtype = w_ref.dtype
    if E < 256:
        # One K=2E dot fills the 256-deep v6e/v7x MXU (two K=E dots would
        # each only half-fill it).  The concat stays on resident data.
        lhs = jnp.concatenate(
            [state.astype(w_dtype), inp.astype(w_dtype)], axis=-1)
        z = jnp.dot(lhs, w_ref[...], preferred_element_type=jnp.float32)
    else:
        # K=E already >= 256: two dots, no (TB, 2E) concat copy.
        z = jnp.dot(state.astype(w_dtype), w_ref[:E, :],
                    preferred_element_type=jnp.float32)
        z = z + jnp.dot(inp.astype(w_dtype), w_ref[E:, :],
                        preferred_element_type=jnp.float32)
    z = z + b_ref[...]

    # sigmoid(x) = 0.5 * tanh(0.5 * x) + 0.5  -> single EUP pass over 2E lanes.
    gates = 0.5 * jnp.tanh(0.5 * z[:, : 2 * E]) + 0.5
    forget_status = gates[:, :E]
    mem_gate = gates[:, E:]
    tmp_cell_status = jnp.tanh(z[:, 2 * E:])

    out_cell = cons.astype(jnp.float32) * forget_status + mem_gate * tmp_cell_status
    out_hidden = jnp.tanh(out_cell) * forget_status
    return out_hidden, out_cell


# ---------------------------------------------------------------------------
# Kernels
# ---------------------------------------------------------------------------
def _lstm_step_kernel(state_ref, inp_ref, cons_ref, w_ref, b_ref,
                      hid_ref, cell_ref):
    """Single LSTM_Unit step on a (TB, E) batch tile (faithful forward)."""
    E = hid_ref.shape[-1]
    h, c = _gate_math(state_ref[...], inp_ref[...], cons_ref[...],
                      w_ref, b_ref, E)
    hid_ref[...] = h.astype(hid_ref.dtype)
    cell_ref[...] = c.astype(cell_ref.dtype)


def _lstm_seq_kernel(h0_ref, c0_ref, x_ref, w_ref, b_ref,
                     hs_ref, cs_ref, h_scr, c_scr):
    """T fused timesteps: grid=(batch_tiles, T), state carried in VMEM scratch.

    The weight/bias index_maps are constant, so they are DMA'd once and stay
    resident across the whole time sweep of each batch tile.
    """
    E = h_scr.shape[-1]

    @pl.when(pl.program_id(1) == 0)
    def _():
        h_scr[...] = h0_ref[...].astype(jnp.float32)
        c_scr[...] = c0_ref[...].astype(jnp.float32)

    h, c = _gate_math(h_scr[...], x_ref[0], c_scr[...], w_ref, b_ref, E)

    h_scr[...] = h
    c_scr[...] = c
    hs_ref[0] = h.astype(hs_ref.dtype)
    cs_ref[0] = c.astype(cs_ref.dtype)


# ---------------------------------------------------------------------------
# Init-time packing & wrapper helpers
# ---------------------------------------------------------------------------
def prepare_params(params, mxu_dtype=jnp.bfloat16):
    """One-time packing of the PyTorch Linear params.

    params: wf/wi/wc of shape (E, 2E) (PyTorch Linear layout), bf/bi/bc of (E,).
    Returns:
        w_fused (2E, 3E) in `mxu_dtype` (bf16): rows [0:E] contract with state,
                rows [E:2E] with input; columns are [forget | mem_gate | cand].
        b       (1, 3E)  f32 fused bias.
    """
    E = params["bf"].shape[0]
    w_fused = jnp.concatenate(
        [params["wf"].T, params["wi"].T, params["wc"].T], axis=1)   # (2E, 3E)
    b = jnp.concatenate(
        [params["bf"], params["bi"], params["bc"]]).reshape(1, 3 * E)
    return w_fused.astype(mxu_dtype), b.astype(jnp.float32)


def _pick_batch_tile(B, block_b):
    """Pick a batch tile that divides B; prefer >=2 grid steps (v7x megacore)."""
    cands = sorted({t for t in (block_b, 512, 256, 128, 64, 32, 16, 8)
                    if 0 < t <= B and B % t == 0}, reverse=True)
    if not cands:
        return B                      # ragged/tiny batch: one full-size tile
    tb = cands[0]
    if tb == B and len(cands) > 1:
        tb = cands[1]                 # force >=2 "parallel" steps when possible
    return tb


def _vmem_limit_bytes(TB, E, n_act_streams, w_bytes=2, act_bytes=4,
                      scratch_rows=0):
    weights = 2 * (2 * E) * (3 * E) * w_bytes + 2 * (3 * E) * 4   # dbl-buffered
    acts = 2 * n_act_streams * TB * E * act_bytes                 # dbl-buffered
    scratch = scratch_rows * TB * E * 4
    need = weights + acts + scratch
    # Generous headroom, capped well below v7x's 64 MiB physical VMEM.
    return int(max(8 << 20, min(2 * need, 48 << 20)))


# ---------------------------------------------------------------------------
# Public wrappers
# ---------------------------------------------------------------------------
@functools.partial(jax.jit, static_argnames=("block_b",))
def lstm_unit(state, inp, cons, w_fused, b, *, block_b=256):
    """Single LSTM_Unit forward step. Returns (out_hidden, out_cell_status)."""
    B, E = state.shape
    TB = _pick_batch_tile(B, block_b)

    act_spec = pl.BlockSpec((TB, E), lambda i: (i, 0))
    w_spec = pl.BlockSpec((2 * E, 3 * E), lambda i: (0, 0))   # resident weight
    b_spec = pl.BlockSpec((1, 3 * E), lambda i: (0, 0))

    out_hidden, out_cell = pl.pallas_call(
        _lstm_step_kernel,
        out_shape=(jax.ShapeDtypeStruct((B, E), state.dtype),
                   jax.ShapeDtypeStruct((B, E), state.dtype)),
        grid=(B // TB,),
        in_specs=[act_spec, act_spec, act_spec, w_spec, b_spec],
        out_specs=(act_spec, act_spec),
        compiler_params=pltpu.CompilerParams(
            dimension_semantics=("parallel",),
            vmem_limit_bytes=_vmem_limit_bytes(TB, E, n_act_streams=5)),
    )(state, inp, cons, w_fused, b)
    return out_hidden, out_cell


@functools.partial(jax.jit, static_argnames=("block_b",))
def lstm_unit_seq(h0, c0, xs, w_fused, b, *, block_b=256):
    """T fused LSTM_Unit steps in ONE pallas_call.

    Recurrence: state_{t+1} = out_hidden_t, cons_{t+1} = out_cell_status_t.
    Returns (hs, cs) each of shape (T, B, E).
    """
    T, B, E = xs.shape
    TB = _pick_batch_tile(B, block_b)

    init_spec = pl.BlockSpec((TB, E), lambda bi, t: (bi, 0))
    x_spec = pl.BlockSpec((1, TB, E), lambda bi, t: (t, bi, 0))
    w_spec = pl.BlockSpec((2 * E, 3 * E), lambda bi, t: (0, 0))
    b_spec = pl.BlockSpec((1, 3 * E), lambda bi, t: (0, 0))
    out_spec = pl.BlockSpec((1, TB, E), lambda bi, t: (t, bi, 0))

    hs, cs = pl.pallas_call(
        _lstm_seq_kernel,
        out_shape=(jax.ShapeDtypeStruct((T, B, E), h0.dtype),
                   jax.ShapeDtypeStruct((T, B, E), h0.dtype)),
        grid=(B // TB, T),
        in_specs=[init_spec, init_spec, x_spec, w_spec, b_spec],
        out_specs=(out_spec, out_spec),
        scratch_shapes=[pltpu.VMEM((TB, E), jnp.float32),
                        pltpu.VMEM((TB, E), jnp.float32)],
        compiler_params=pltpu.CompilerParams(
            dimension_semantics=("parallel", "arbitrary"),
            vmem_limit_bytes=_vmem_limit_bytes(TB, E, n_act_streams=5,
                                               scratch_rows=2)),
    )(h0, c0, xs, w_fused, b)
    return hs, cs


# ---------------------------------------------------------------------------
# Pure-JAX references (f32, PyTorch semantics)
# ---------------------------------------------------------------------------
def _ref_step(state, inp, cons, params):
    concat = jnp.concatenate([state, inp], axis=-1)
    f = jax.nn.sigmoid(concat @ params["wf"].T + params["bf"])
    i = jax.nn.sigmoid(concat @ params["wi"].T + params["bi"])
    c = jnp.tanh(concat @ params["wc"].T + params["bc"])
    out_cell = cons * f + i * c
    out_hidden = jnp.tanh(out_cell) * f
    return out_hidden, out_cell


def _ref_seq(h0, c0, xs, params):
    def body(carry, x):
        h, c = carry
        h2, c2 = _ref_step(h, x, c, params)
        return (h2, c2), (h2, c2)
    _, (hs, cs) = jax.lax.scan(body, (h0, c0), xs)
    return hs, cs


if __name__ == "__main__":
    # E multiple of 128 -> lane-dense gate slices; B=256 -> MXU rows well
    # filled and 2 batch tiles for the "parallel" axis (v7x megacore).
    B, E, T = 256, 128, 8
    key = jax.random.PRNGKey(0)
    ks = jax.random.split(key, 12)

    state = jax.random.normal(ks[0], (B, E), dtype=jnp.float32)
    inp = jax.random.normal(ks[1], (B, E), dtype=jnp.float32)
    cons = jax.random.normal(ks[2], (B, E), dtype=jnp.float32)
    xs = jax.random.normal(ks[3], (T, B, E), dtype=jnp.float32)

    scale = 1.0 / jnp.sqrt(2.0 * E)   # ~ PyTorch Linear default init range
    params = {
        "wf": jax.random.uniform(ks[4], (E, 2 * E), minval=-scale, maxval=scale),
        "bf": jax.random.uniform(ks[5], (E,), minval=-scale, maxval=scale),
        "wi": jax.random.uniform(ks[6], (E, 2 * E), minval=-scale, maxval=scale),
        "bi": jax.random.uniform(ks[7], (E,), minval=-scale, maxval=scale),
        "wc": jax.random.uniform(ks[8], (E, 2 * E), minval=-scale, maxval=scale),
        "bc": jax.random.uniform(ks[9], (E,), minval=-scale, maxval=scale),
    }

    # Init-time packing (done once, NOT per forward call).  bf16 MXU operands.
    w_fused, b_fused = prepare_params(params)

    # --- single-step kernel (faithful forward) -----------------------------
    out_h, out_c = jax.block_until_ready(
        lstm_unit(state, inp, cons, w_fused, b_fused))
    ref_h, ref_c = _ref_step(state, inp, cons, params)
    # bf16 MXU operands vs f32 reference -> relaxed tolerance.
    assert jnp.allclose(out_h, ref_h, atol=3e-2, rtol=3e-2)
    assert jnp.allclose(out_c, ref_c, atol=3e-2, rtol=3e-2)

    # --- fused T-step kernel (weight DMA amortized over T) -----------------
    hs, cs = jax.block_until_ready(
        lstm_unit_seq(state, cons, xs, w_fused, b_fused))
    ref_hs, ref_cs = _ref_seq(state, cons, xs, params)
    assert jnp.allclose(hs, ref_hs, atol=5e-2, rtol=5e-2)
    assert jnp.allclose(cs, ref_cs, atol=5e-2, rtol=5e-2)

    print("KERNEL_OK")
</pallas_src>

<mosaic_0001>
module attributes {stable_mosaic.version = 11 : i64} {
  func.func @_lstm_step_kernel(%arg0: i32, %arg1: memref<128x128xf32, #tpu.memory_space<vmem>>, %arg2: memref<128x128xf32, #tpu.memory_space<vmem>>, %arg3: memref<128x128xf32, #tpu.memory_space<vmem>>, %arg4: memref<256x384xbf16, #tpu.memory_space<vmem>>, %arg5: memref<1x384xf32, #tpu.memory_space<vmem>>, %arg6: memref<128x128xf32, #tpu.memory_space<vmem>>, %arg7: memref<128x128xf32, #tpu.memory_space<vmem>>) attributes {dimension_semantics = [#tpu.dimension_semantics<parallel>], iteration_bounds = array<i64: 2>, scalar_prefetch = 0 : i64, scratch_operands = 0 : i64, tpu.core_type = #tpu.core_type<tc>, window_params = [{transform_indices = @transform_0, window_bounds = array<i64: 128, 128>}, {transform_indices = @transform_1, window_bounds = array<i64: 128, 128>}, {transform_indices = @transform_2, window_bounds = array<i64: 128, 128>}, {pipeline_mode = #tpu.pipeline_mode<synchronous>, transform_indices = @transform_3, window_bounds = array<i64: 256, 384>}, {pipeline_mode = #tpu.pipeline_mode<synchronous>, transform_indices = @transform_4, window_bounds = array<i64: 1, 384>}, {transform_indices = @transform_5, window_bounds = array<i64: 128, 128>}, {transform_indices = @transform_6, window_bounds = array<i64: 128, 128>}]} {
    %c0 = arith.constant 0 : index
    %c0_0 = arith.constant 0 : index
    %0 = vector.load %arg1[%c0, %c0_0] : memref<128x128xf32, #tpu.memory_space<vmem>>, vector<128x128xf32>
    %c0_1 = arith.constant 0 : index
    %c0_2 = arith.constant 0 : index
    %1 = vector.load %arg2[%c0_1, %c0_2] : memref<128x128xf32, #tpu.memory_space<vmem>>, vector<128x128xf32>
    %c0_3 = arith.constant 0 : index
    %c0_4 = arith.constant 0 : index
    %2 = vector.load %arg3[%c0_3, %c0_4] : memref<128x128xf32, #tpu.memory_space<vmem>>, vector<128x128xf32>
    %3 = arith.truncf %0 : vector<128x128xf32> to vector<128x128xbf16>
    %4 = arith.truncf %1 : vector<128x128xf32> to vector<128x128xbf16>
    %5 = tpu.concatenate %3, %4 in 1 : vector<128x128xbf16>, vector<128x128xbf16> -> vector<128x256xbf16>
    %c0_5 = arith.constant 0 : index
    %c0_6 = arith.constant 0 : index
    %6 = vector.load %arg4[%c0_5, %c0_6] : memref<256x384xbf16, #tpu.memory_space<vmem>>, vector<256x384xbf16>
    %cst = arith.constant dense<0.000000e+00> : vector<128x384xf32>
    %7 = tpu.matmul %5, %6, %cst {dimension_numbers = #tpu.dot_dimension_numbers<[1], [0], [0], [1], [0, 0, 1, 1], [], []>} : vector<128x256xbf16>, vector<256x384xbf16>, vector<128x384xf32> -> vector<128x384xf32>
    %c0_7 = arith.constant 0 : index
    %c0_8 = arith.constant 0 : index
    %8 = vector.load %arg5[%c0_7, %c0_8] : memref<1x384xf32, #tpu.memory_space<vmem>>, vector<1x384xf32>
    %9 = vector.broadcast %8 : vector<1x384xf32> to vector<128x384xf32>
    %10 = arith.addf %7, %9 : vector<128x384xf32>
    %11 = vector.extract_strided_slice %10 {offsets = [0, 0], sizes = [128, 256], strides = [1, 1]} : vector<128x384xf32> to vector<128x256xf32>
    %cst_9 = arith.constant 5.000000e-01 : f32
    %12 = vector.broadcast %cst_9 : f32 to vector<128x256xf32>
    %13 = arith.mulf %12, %11 : vector<128x256xf32>
    %14 = math.tanh %13 : vector<128x256xf32>
    %cst_10 = arith.constant 5.000000e-01 : f32
    %15 = vector.broadcast %cst_10 : f32 to vector<128x256xf32>
    %16 = arith.mulf %15, %14 : vector<128x256xf32>
    %cst_11 = arith.constant 5.000000e-01 : f32
    %17 = vector.broadcast %cst_11 : f32 to vector<128x256xf32>
    %18 = arith.addf %16, %17 : vector<128x256xf32>
    %19 = vector.extract_strided_slice %18 {offsets = [0, 0], sizes = [128, 128], strides = [1, 1]} : vector<128x256xf32> to vector<128x128xf32>
    %20 = vector.extract_strided_slice %18 {offsets = [0, 128], sizes = [128, 128], strides = [1, 1]} : vector<128x256xf32> to vector<128x128xf32>
    %21 = vector.extract_strided_slice %10 {offsets = [0, 256], sizes = [128, 128], strides = [1, 1]} : vector<128x384xf32> to vector<128x128xf32>
    %22 = math.tanh %21 : vector<128x128xf32>
    %23 = arith.mulf %2, %19 : vector<128x128xf32>
    %24 = arith.mulf %20, %22 : vector<128x128xf32>
    %25 = arith.addf %23, %24 : vector<128x128xf32>
    %26 = math.tanh %25 : vector<128x128xf32>
    %27 = arith.mulf %26, %19 : vector<128x128xf32>
    %c0_12 = arith.constant 0 : index
    %c0_13 = arith.constant 0 : index
    %28 = vector.load %arg6[%c0_12, %c0_13] : memref<128x128xf32, #tpu.memory_space<vmem>>, vector<128x128xf32>
    tpu.vector_store %arg6[%c0_12, %c0_13], %27 {strides = array<i32>} : memref<128x128xf32, #tpu.memory_space<vmem>>, vector<128x128xf32>,
    %c0_14 = arith.constant 0 : index
    %c0_15 = arith.constant 0 : index
    %29 = vector.load %arg7[%c0_14, %c0_15] : memref<128x128xf32, #tpu.memory_space<vmem>>, vector<128x128xf32>
    tpu.vector_store %arg7[%c0_14, %c0_15], %25 {strides = array<i32>} : memref<128x128xf32, #tpu.memory_space<vmem>>, vector<128x128xf32>,
    return
  }
  func.func @transform_0(%arg0: i32) -> (i32, i32) {
    %c0_i32 = arith.constant 0 : i32
    %c0_i32_0 = arith.constant 0 : i32
    return %arg0, %c0_i32 : i32, i32
  }
  func.func @transform_1(%arg0: i32) -> (i32, i32) {
    %c0_i32 = arith.constant 0 : i32
    %c0_i32_0 = arith.constant 0 : i32
    return %arg0, %c0_i32 : i32, i32
  }
  func.func @transform_2(%arg0: i32) -> (i32, i32) {
    %c0_i32 = arith.constant 0 : i32
    %c0_i32_0 = arith.constant 0 : i32
    return %arg0, %c0_i32 : i32, i32
  }
  func.func @transform_3(%arg0: i32) -> (i32, i32) {
    %c0_i32 = arith.constant 0 : i32
    %c0_i32_0 = arith.constant 0 : i32
    %c0_i32_1 = arith.constant 0 : i32
    return %c0_i32, %c0_i32_0 : i32, i32
  }
  func.func @transform_4(%arg0: i32) -> (i32, i32) {
    %c0_i32 = arith.constant 0 : i32
    %c0_i32_0 = arith.constant 0 : i32
    %c0_i32_1 = arith.constant 0 : i32
    return %c0_i32, %c0_i32_0 : i32, i32
  }
  func.func @transform_5(%arg0: i32) -> (i32, i32) {
    %c0_i32 = arith.constant 0 : i32
    %c0_i32_0 = arith.constant 0 : i32
    return %arg0, %c0_i32 : i32, i32
  }
  func.func @transform_6(%arg0: i32) -> (i32, i32) {
    %c0_i32 = arith.constant 0 : i32
    %c0_i32_0 = arith.constant 0 : i32
    return %arg0, %c0_i32 : i32, i32
  }
}

</mosaic_0001>

<bundles_post_ra>
// kernel: lstm_unit.1
= control target key start
LH: loop header
LB: loop body
LE: loop exit
PB: predicated region body
PF: predicated region fallthrough
CT: control target
= control target key end

     0   :  { %s2734_s0 = inlined_call_operand.hbm [shape: f32[256,128], index: 0, kind: input, shape index: {}]   ;;  %s2735_s1 = inlined_call_operand.hbm [shape: f32[256,128], index: 1, kind: input, shape index: {}]   ;;  %s2736_s2 = inlined_call_operand.hbm [shape: f32[256,128], index: 2, kind: input, shape index: {}]   ;;  %s2737_s3 = inlined_call_operand.hbm [shape: bf16[256,384], index: 3, kind: input, shape index: {}]   ;;  %s2738_s4 = inlined_call_operand.vmem [shape: f32[1,384], index: 4, kind: input, shape index: {}]   ;;  %s2739_s5 = inlined_call_operand.hbm [shape: f32[256,128], index: 5, kind: output, shape index: {0}]   ;;  %s2740_s6 = inlined_call_operand.hbm [shape: f32[256,128], index: 6, kind: output, shape index: {1}]  }
   0x1   :  { %2762 = sst [smem:[#allocation23_spill]] %s2735_s1 }
   0x2   :  { %2763 = sst [smem:[#allocation24_spill]] %s2739_s5 }
   0x3   :  { %2764 = sst [smem:[#allocation25_spill]] %s2740_s6 }
   0x4   :  { %12 = vsyncpa [#allocation3], 0 }
   0x5   :  { %14 = vsyncpa [#allocation3 + $0x1], 0 }
   0x6   :  { %15 = vsyncpa [#allocation6], 0 }
   0x7   :  { %17 = vsyncpa [#allocation6 + $0x1], 0 }
   0x8   :  { %18 = vsyncpa [#allocation9], 0 }
   0x9   :  { %19 = vsyncpa [#allocation4], 0 }
   0xa   :  { %21 = vsyncpa [#allocation4 + $0x1], 0 }
   0xb   :  { %22 = vsyncpa [#allocation12], 0 }
   0xc   :  { %24 = vsyncpa [#allocation12 + $0x1], 0  ;;  %s2127_s21 = smov 0   ;;  %s2129_s22 = smov 0  }
   0xd   :  { %s2131_s23 = smov 0   ;;  %s2133_s24 = smov 0  }
   0xe LB: > { %2765 = sst [smem:[#allocation18_spill]] %s2066_s21  ;;  %s2148_s25 = sadd.s32 1, %s2078_s24   ;;  %s2078_s24 = sphi %s2133_s24, %s2796_s24   ;;  %s2074_s23 = sphi %s2131_s23, %s2800_s23   ;;  %s2070_s22 = sphi %s2129_s22, %s2799_s22   ;;  %s2066_s21 = sphi %s2127_s21, %s2798_s21  }
   0xf   : > { %2766 = sst [smem:[#allocation19_spill]] %s2078_s24  ;;  %s37_s26 = sadd.s32 1, %s2074_s23 }
  0x10   : > { %2767 = sst [smem:[#allocation20_spill]] %s2148_s25  ;;  %s34_s27 = ssub.s32 %s2078_s24, %s2148_s25 }
  0x11   : > { %p2741_p0 = scmp.ne.s32.totalorder %s2074_s23, %s2070_s22  ;;  %p35_p1 = scmp.eq.s32.totalorder %s34_s27, 0 }
  0x12   : > { %p45_p2 = scmp.eq.s32.totalorder %s2078_s24, 0  ;;  %p1620_p4 = scmp.lt.s32.totalorder %s2078_s24, 2 }
  0x13   : > { %s2159_s28 = scalar_select %p35_p1, %s2074_s23, %s37_s26  }
  0x14   : > { %p46_p5 = por %p45_p2, %p2741_p0  ;;  %s2746_s29 = sand.u32 1, %s2074_s23  }
  0x15   : > { %2768 = sst [smem:[#allocation21_spill]] %s2159_s28  ;;  %s2167_s30 = sshll.u32 %s2746_s29, 7 }
  0x16   : > { %s2170_s7 = sshll.u32 %s2078_s24, 11  ;;  %p2172_p6 = pnand %p1620_p4, %p46_p5 }
  0x17   : > { %s257_s9 = sand.u32 1, %s2078_s24   ;;  %s2770_s1 = sld [smem:[#allocation23_spill]] }
  0x18   : > { %s2769_s8 = scalar_select %p2172_p6, 1, 0 }
  0x19   : > { %s261_s13 = scalar_lea.vmem [#allocation5], %s2167_s30  ;;  %s2186_s15 = scalar_lea.sflag [#allocation6], %s257_s9 }
  0x1a   : > { %s268_s14 = sshll.u32 %s261_s13, 4  ;;  %p2192_p8 = pneg %p2172_p6  ;;  %s2184_s14 = int_to_ptr.vmem [resolvable:$true] %s268_s14 }
  0x1c   : > { %s2771_s17 = scalar_select %p2192_p8, 1, 0 }
  0x1d   : > { %s2181_s12 = scalar_lea.hbm %s2770_s1, %s2170_s7  ;;  %s1859_s20 = scalar_lea.hbm %s2770_s1, 4096 }
  0x1e   : > { %s1854_s16 = scalar_lea.hbm %s2181_s12, 2048  ;;  %p1860_p11 = scmp.lt.u32.totalorder %s2181_s12, %s2770_s1 }
  0x1f   : > { %p1855_p7 = scmp.ne.s32.totalorder %s2181_s12, %s1854_s16  ;;  %p1861_p12 = scmp.lt.u32.totalorder %s1859_s20, %s1854_s16 }
  0x20   : > { %p1863_p1 = scmp.lt.u32.totalorder %s1854_s16, %s2181_s12 }
  0x21   : > { %p1857_p9 = pnand %p2192_p8, %p1855_p7  ;;  %p1862_p13 = por %p1861_p12, %p1860_p11 }
  0x23   : > { %p1858_p10 = pneg %p1857_p9  ;;  %p1864_p2 = por %p1863_p1, %p1862_p13 }
  0x25   : > { %p1865_p4 = pnand %p1864_p2, %p1858_p10 }
  0x27   : > { %1868 = shalt.err (!%p1865_p4)
}
  0x28   : > { %s1869_s9 = scalar_lea.vmem %s2184_s14, 2048  ;;  %s2080_s10 = smov [#allocation5]  }
  0x29   : > { %p1870_p5 = scmp.ne.s32.totalorder %s2184_s14, %s1869_s9  ;;  %s1874_s11 = sshll.u32 %s2080_s10, 4  ;;  %s1875_s11 = int_to_ptr.vmem [resolvable:$false] %s1874_s11 }
  0x2a   : > { %s1876_s13 = scalar_lea.vmem %s1875_s11, 4096  ;;  %p1877_p3 = scmp.lt.s32.totalorder %s2184_s14, %s1875_s11 }
  0x2b   : > { %p1872_p7 = pnand %p1870_p5, %p2192_p8  ;;  %p1878_p0 = scmp.lt.s32.totalorder %s1876_s13, %s1869_s9 }
  0x2d   : > { %p1873_p9 = pneg %p1872_p7  ;;  %p1879_p11 = por %p1878_p0, %p1877_p3 }
  0x2f   : > { %p1880_p12 = pnand %p1879_p11, %p1873_p9 }
  0x31   : > { %1883 = shalt.err (!%p1880_p12)
}
  0x32   : > { %s2742_s16 = smov 128   ;;  %s2744_s18 = smov 8  }
  0x33   : > { %1608 = dma.hbm_to_vmem [thread:$0]  (!%p2172_p6), %s2181_s12, 2048, %s2184_s14, %s2186_s15, %s2742_s16, %s2742_s16, %s2744_s18  }
  0x34   : > { %s2220_s19 = sadd.s32 4294967295, %s2078_s24   ;;  %s1439_s20 = sadd.s32 4294967294, %s2078_s24  }
  0x35   : > { %p50_p0 = scmp.ne.s32.totalorder %s2070_s22, %s2066_s21  ;;  %p2752_p3 = scmp.eq.s32.totalorder %s2220_s19, 0 }
  0x36   : > { %p168_p10 = scmp.eq.s32.totalorder %s2220_s19, 1  ;;  %p174_p13 = scmp.eq.s32.totalorder %s1439_s20, 1 }
  0x37   : > { %p2229_p1 = por %p2752_p3, %p50_p0  ;;  %p1440_p2 = scmp.ge.s32.totalorder %s2078_s24, 1 }
  0x38   : > { %p2773_p4 = scmp.ne.s32.totalorder %s2074_s23, %s2070_s22  ;;  %p2241_p7 = por %p174_p13, %p50_p0 }
  0x39   : > { %s2772_s26 = scalar_select %p2229_p1, 1, 0 }
  0x3a   : > { %p2237_p5 = por %p168_p10, %p2773_p4  ;;  %p207_p9 = scmp.lt.s32.totalorder %s2078_s24, 3 }
  0x3b   : > { %s2775_s14 = scalar_select %p2241_p7, 1, 0 }
  0x3c   : > { %s2774_s12 = scalar_select %p2237_p5, 1, 0 }
  0x3d   : > { %2776 = sst [smem:[#allocation22_spill]] %s2775_s14  ;;  %p2246_p11 = pnand %p1440_p2, %p207_p9 }
  0x3e   : > { %s2083_s9 = smov [#allocation8]   ;;  %s2258_s20 = scalar_lea.hbm %s2734_s0, %s2170_s7 }
  0x3f   : > { %s2777_s27 = scalar_select %p2246_p11, 1, 0 }
  0x40   : > { %s219_s10 = sshll.u32 %s2083_s9, 4  ;;  %p1598_p12 = pneg %p2246_p11  ;;  %s2250_s10 = int_to_ptr.vmem [resolvable:$true] %s219_s10 }
  0x41   : > { %s240_s18 = scalar_lea.vmem [#allocation2], %s2167_s30  ;;  %s2273_s28 = scalar_lea.hbm %s2736_s2, %s2170_s7 }
  0x42   : > { %p2262_p0 = pnand %p1598_p12, %p2752_p3  ;;  %s247_s29 = sshll.u32 %s240_s18, 4  ;;  %s2267_s29 = int_to_ptr.vmem [resolvable:$true] %s247_s29 }
  0x43   : > { %s1884_s11 = scalar_lea.hbm %s2737_s3, 6144 }
  0x44   : > { %p1885_p10 = scmp.ne.s32.totalorder %s2737_s3, %s1884_s11  ;;  %p1886_p13 = pneg %p2262_p0 }
  0x45   : > { %p1891_p9 = scmp.lt.u32.totalorder %s1884_s11, %s2737_s3 }
  0x46   : > { %p1887_p2 = pnand %p1886_p13, %p1885_p10 }
  0x48   : > { %p1888_p4 = pneg %p1887_p2 }
  0x4a   : > { %p1893_p12 = pnand %p1891_p9, %p1888_p4 }
  0x4c   : > { %1896 = shalt.err (!%p1893_p12)
}
  0x4d   : > { %s1897_s1 = scalar_lea.vmem %s2250_s10, 6144  ;;  %p1905_p1 = scmp.lt.s32.totalorder %s2250_s10, %s2250_s10 }
  0x4e   : > { %p1898_p3 = scmp.ne.s32.totalorder %s2250_s10, %s1897_s1  ;;  %p1906_p11 = scmp.lt.s32.totalorder %s1897_s1, %s1897_s1 }
  0x50   : > { %p1900_p7 = pnand %p1898_p3, %p1886_p13  ;;  %p1907_p6 = por %p1906_p11, %p1905_p1 }
  0x52   : > { %p1901_p5 = pneg %p1900_p7 }
  0x54   : > { %p1908_p8 = pnand %p1907_p6, %p1901_p5 }
  0x56   : > { %1911 = shalt.err (!%p1908_p8)
}
  0x57   : > { %s2084_s24 = smov 192   ;;  %s2085_s21 = smov 12  }
  0x58   : > { %1601 = dma.hbm_to_vmem [thread:$0]  (!%p2262_p0), %s2737_s3, 6144, %s2250_s10, [#allocation9], %s2084_s24, %s2084_s24, %s2085_s21  }
  0x59   : > { %s2779_s14 = sand.u32 1, %s2074_s23   ;;  %s1912_s11 = scalar_lea.hbm %s2258_s20, 2048 }
  0x5a   : > { %s2298_s9 = scalar_lea.sflag [#allocation3], %s2779_s14  ;;  %p1913_p6 = scmp.ne.s32.totalorder %s2258_s20, %s1912_s11 }
  0x5b   : > { %p2780_p8 = scmp.ne.s32.totalorder %s2771_s17, 0  ;;  %s1917_s1 = scalar_lea.hbm %s2734_s0, 4096 }
  0x5c   : > { %p1918_p5 = scmp.lt.u32.totalorder %s2258_s20, %s2734_s0  ;;  %p1919_p7 = scmp.lt.u32.totalorder %s1917_s1, %s1912_s11 }
  0x5d   : > { %p1915_p3 = pnand %p1913_p6, %p2780_p8  ;;  %p1921_p10 = scmp.lt.u32.totalorder %s1912_s11, %s2258_s20 }
  0x5e   : > { %p1920_p11 = por %p1919_p7, %p1918_p5 }
  0x5f   : > { %p1916_p1 = pneg %p1915_p3 }
  0x60   : > { %p1922_p0 = por %p1921_p10, %p1920_p11 }
  0x62   : > { %p1923_p13 = pnand %p1922_p0, %p1916_p1 }
  0x64   : > { %1926 = shalt.err (!%p1923_p13)
}
  0x65   : > { %s1927_s16 = scalar_lea.vmem %s2267_s29, 2048  ;;  %s2086_s10 = smov [#allocation2]  }
  0x66   : > { %p1928_p2 = scmp.ne.s32.totalorder %s2267_s29, %s1927_s16  ;;  %s1932_s24 = sshll.u32 %s2086_s10, 4  ;;  %s1933_s24 = int_to_ptr.vmem [resolvable:$false] %s1932_s24 }
  0x67   : > { %s1934_s5 = scalar_lea.vmem %s1933_s24, 4096  ;;  %p1935_p12 = scmp.lt.s32.totalorder %s2267_s29, %s1933_s24 }
  0x68   : > { %p1930_p4 = pnand %p1928_p2, %p2780_p8  ;;  %p1936_p6 = scmp.lt.s32.totalorder %s1934_s5, %s1927_s16 }
  0x6a   : > { %p1931_p9 = pneg %p1930_p4  ;;  %p1937_p3 = por %p1936_p6, %p1935_p12 }
  0x6c   : > { %p1938_p5 = pnand %p1937_p3, %p1931_p9 }
  0x6e   : > { %1941 = shalt.err (!%p1938_p5)
}
  0x6f   : > { %p2781_p1 = scmp.ne.s32.totalorder %s2769_s8, 0  ;;  %s2782_s6 = smov 8  }
  0x70   : > { %s2783_s21 = smov 128   ;;  %s282_s25 = scalar_lea.vmem [#allocation7], %s2167_s30 }
  0x71   : > { %1605 = dma.hbm_to_vmem [thread:$0]  (!%p2781_p1), %s2258_s20, 2048, %s2267_s29, %s2298_s9, %s2783_s21, %s2783_s21, %s2782_s6  }
  0x72   : > { %s289_s7 = sshll.u32 %s282_s25, 4  ;;  %s1942_s14 = scalar_lea.hbm %s2273_s28, 2048  ;;  %s2326_s7 = int_to_ptr.vmem [resolvable:$true] %s289_s7 }
  0x73   : > { %p1943_p7 = scmp.ne.s32.totalorder %s2273_s28, %s1942_s14  ;;  %s1947_s18 = scalar_lea.hbm %s2736_s2, 4096 }
  0x74   : > { %p1948_p0 = scmp.lt.u32.totalorder %s2273_s28, %s2736_s2  ;;  %p1949_p13 = scmp.lt.u32.totalorder %s1947_s18, %s1942_s14 }
  0x75   : > { %p1945_p11 = pnand %p1943_p7, %p2780_p8  ;;  %p1951_p4 = scmp.lt.u32.totalorder %s1942_s14, %s2273_s28 }
  0x76   : > { %p1950_p2 = por %p1949_p13, %p1948_p0 }
  0x77   : > { %p1946_p10 = pneg %p1945_p11 }
  0x78   : > { %p1952_p9 = por %p1951_p4, %p1950_p2 }
  0x7a   : > { %p1953_p12 = pnand %p1952_p9, %p1946_p10 }
  0x7c   : > { %1956 = shalt.err (!%p1953_p12)
}
  0x7d   : > { %s1957_s29 = scalar_lea.vmem %s2326_s7, 2048  ;;  %s2087_s30 = smov [#allocation7]  }
  0x7e   : > { %p1958_p6 = scmp.ne.s32.totalorder %s2326_s7, %s1957_s29  ;;  %s1962_s20 = sshll.u32 %s2087_s30, 4  ;;  %s1963_s20 = int_to_ptr.vmem [resolvable:$false] %s1962_s20 }
  0x7f   : > { %s1964_s9 = scalar_lea.vmem %s1963_s20, 4096  ;;  %p1965_p7 = scmp.lt.s32.totalorder %s2326_s7, %s1963_s20 }
  0x80   : > { %p1960_p3 = pnand %p1958_p6, %p2780_p8  ;;  %p1966_p11 = scmp.lt.s32.totalorder %s1964_s9, %s1957_s29 }
  0x82   : > { %p1961_p5 = pneg %p1960_p3  ;;  %p1967_p0 = por %p1966_p11, %p1965_p7 }
  0x84   : > { %p1968_p13 = pnand %p1967_p0, %p1961_p5 }
  0x86   : > { %1971 = shalt.err (!%p1968_p13)
}
  0x87   : > { %1611 = dma.hbm_to_vmem [thread:$0]  (!%p2781_p1), %s2273_s28, 2048, %s2326_s7, %s2186_s15, %s2783_s21, %s2783_s21, %s2782_s6  }
  0x88   : > { %p2784_p8 = scmp.ne.s32.totalorder %s2777_s27, 0 }
  0x89   : > { %s2356_s17 = sand.u32 (!%p2784_p8), 1, %s2070_s22   ;;  %p2785_p10 = scmp.ne.s32.totalorder (!%p2784_p8), %s2772_s26, 0 }
  0x8a   : > { %301 = sbr.rel (%p2784_p8) target bundleno = 554 (0x22a), region = 40  ;;  %s2359_s10 = sshll.u32 (!%p2784_p8), %s2356_s17, 7 }
  0x8b   : > { %s304_s8 = scalar_lea.sflag (!%p2784_p8), [#allocation3], %s2356_s17  ;;  %s2363_s24 = scalar_lea.vmem (!%p2784_p8), [#allocation2], %s2359_s10 }
  0x91   : > { %2045 = dma.done.wait (%p2785_p10), %s304_s8, 2048  }
  0x92   : > { %2047 = vsyncadd (%p2785_p10), %s304_s8, 4294965248  ;;  %s312_s28 = sand.u32 1, %s2220_s19   ;;  %s2371_s27 = scalar_lea.vmem [#allocation5], %s2359_s10 }
  0x93   : > { %s313_s15 = scalar_lea.sflag [#allocation6], %s312_s28 }
  0x94   : > { %2049 = dma.done.wait (%p2785_p10), %s313_s15, 4096  }
  0x95   : > { %2051 = vsyncadd (%p2785_p10), %s313_s15, 4294963200  ;;  %s2378_s5 = scalar_lea.vmem [#allocation7], %s2359_s10  ;;  %p2786_p1 = scmp.eq.s32.totalorder %s2220_s19, 0 }
  0x97   : > { %2053 = dma.done.wait (%p2786_p1), [#allocation9], 6144   ;;  %p2787_p2 = pmov %p2786_p1 }
  0x98   : > { %v1662_v0 = vld [vmem:[#allocation8 + $0x4] ss:$12 sps:$4 sm:$0xff]   ;;  %v1664_v1 = vld [vmem:[#allocation8] ss:$12 sps:$4 sm:$0xff]   ;;  %v1665_v2 = vld [vmem:[#allocation8 + $0x1c] ss:$12 sps:$4 sm:$0xff]  }
  0x99   : > { %2055 = vsyncadd (%p2787_p2), [#allocation9], 4294961152  ;;  %780 = vmatprep.subr.bf16.mxu0 %v1662_v0  ;;  %v1667_v3 = vld [vmem:[#allocation8 + $0x18] ss:$12 sps:$4 sm:$0xff]   ;;  %v1668_v4 = vld [vmem:[#allocation8 + $0x34] ss:$12 sps:$4 sm:$0xff]  }
  0x9a   : > { %781 = vmatpush1.bf16.msra.mxu0 %v1664_v1  ;;  %v1670_v5 = vld [vmem:[#allocation8 + $0x30] ss:$12 sps:$4 sm:$0xff]   ;;  %v1671_v6 = vld [vmem:[#allocation8 + $0x4c] ss:$12 sps:$4 sm:$0xff]   ;;  %v1673_v7 = vld [vmem:[#allocation8 + $0x48] ss:$12 sps:$4 sm:$0xff]  }
  0x9b   : > { %782 = vmatprep.subr.bf16.mxu0 %v1665_v2  ;;  %v1674_v8 = vld [vmem:[#allocation8 + $0x64] ss:$12 sps:$4 sm:$0xff]   ;;  %v1689_v9 = vld [vmem:[#allocation8 + $0xc8] ss:$12 sps:$4 sm:$0xff]   ;;  %v1676_v11 = vld [vmem:[#allocation8 + $0x60] ss:$12 sps:$4 sm:$0xff]  }
  0x9c   : > { %v1690_v10 = vld [vmem:[#allocation8 + $0x8] ss:$12 sps:$4 sm:$0xff]   ;;  %1520 = vmatprep.subr.bf16.mxu1 %v1689_v9  ;;  %v1694_v13 = vld [vmem:[#allocation8 + $0xe0] ss:$12 sps:$4 sm:$0xff]   ;;  %v1679_v15 = vld [vmem:[#allocation8 + $0x78] ss:$12 sps:$4 sm:$0xff]  }
  0x9d   : > { %v1677_v12 = vld [vmem:[#allocation8 + $0x7c] ss:$12 sps:$4 sm:$0xff]   ;;  %1521 = vmatpush3.bf16.msra.mxu1 %v1690_v10  ;;  %v1695_v14 = vld [vmem:[#allocation8 + $0x20] ss:$12 sps:$4 sm:$0xff]   ;;  %v1699_v17 = vld [vmem:[#allocation8 + $0xf8] ss:$12 sps:$4 sm:$0xff]  }
  0x9e   : > { %783 = vmatpush1.bf16.msra.mxu0 %v1667_v3  ;;  %v1680_v16 = vld [vmem:[#allocation8 + $0x94] ss:$12 sps:$4 sm:$0xff]   ;;  %1522 = vmatprep.subr.bf16.mxu1 %v1694_v13  ;;  %v1700_v18 = vld [vmem:[#allocation8 + $0x38] ss:$12 sps:$4 sm:$0xff]   ;;  %v1682_v19 = vld [vmem:[#allocation8 + $0x90] ss:$12 sps:$4 sm:$0xff]  }
  0x9f   : > { %784 = vmatprep.subr.bf16.mxu0 %v1668_v4  ;;  %v1704_v20 = vld [vmem:[#allocation8 + $0x110] ss:$12 sps:$4 sm:$0xff]   ;;  %v1683_v22 = vld [vmem:[#allocation8 + $0xac] ss:$12 sps:$4 sm:$0xff]   ;;  %v1685_v23 = vld [vmem:[#allocation8 + $0xa8] ss:$12 sps:$4 sm:$0xff]  }
  0xa0   : > { %v1705_v21 = vld [vmem:[#allocation8 + $0x50] ss:$12 sps:$4 sm:$0xff]   ;;  %v1709_v24 = vld [vmem:[#allocation8 + $0x128] ss:$12 sps:$4 sm:$0xff]   ;;  %v1714_v27 = vld [vmem:[#allocation8 + $0x140] ss:$12 sps:$4 sm:$0xff]  }
  0xa1   : > { %1523 = vmatpush3.bf16.msra.mxu1 %v1695_v14  ;;  %v1710_v25 = vld [vmem:[#allocation8 + $0x68] ss:$12 sps:$4 sm:$0xff]   ;;  %v1686_v26 = vld [vmem:[#allocation8 + $0xc4] ss:$12 sps:$4 sm:$0xff]   ;;  %v1688_v28 = vld [vmem:[#allocation8 + $0xc0] ss:$12 sps:$4 sm:$0xff]  }
  0xa2   : > { %785 = vmatpush1.bf16.msra.mxu0 %v1670_v5  ;;  %1524 = vmatprep.subr.bf16.mxu1 %v1699_v17  ;;  %v1691_v29 = vld [vmem:[#allocation8 + $0xdc] ss:$12 sps:$4 sm:$0xff]   ;;  %v1715_v30 = vld [vmem:[#allocation8 + $0x80] ss:$12 sps:$4 sm:$0xff]   ;;  %v1719_v31 = vld [vmem:[#allocation8 + $0x158] ss:$12 sps:$4 sm:$0xff]  }
  0xa3   : > { %786 = vmatprep.subr.bf16.mxu0 %v1671_v6  ;;  %v1693_v32 = vld [vmem:[#allocation8 + $0xd8] ss:$12 sps:$4 sm:$0xff]   ;;  %v1696_v33 = vld [vmem:[#allocation8 + $0xf4] ss:$12 sps:$4 sm:$0xff]   ;;  %v1724_v35 = vld [vmem:[#allocation8 + $0x170] ss:$12 sps:$4 sm:$0xff]  }
  0xa4   : > { %v1720_v34 = vld [vmem:[#allocation8 + $0x98] ss:$12 sps:$4 sm:$0xff]   ;;  %v396_v37 = vld [vmem:[%s2371_s27 + $0x8] sm:$0xff]  ;;  %v1698_v38 = vld [vmem:[#allocation8 + $0xf0] ss:$12 sps:$4 sm:$0xff]   ;;  %s2466_s21 = scalar_lea.vmem [#allocation11], %s2359_s10 }
  0xa5   : > { %1525 = vmatpush3.bf16.msra.mxu1 %v1700_v18  ;;  %v395_v36 = vld [vmem:[%s2371_s27] sm:$0xff]  ;;  %v1725_v40 = vld [vmem:[#allocation8 + $0xb0] ss:$12 sps:$4 sm:$0xff]   ;;  %v380_v42 = vld [vmem:[%s2363_s24 + $0x8] sm:$0xff]  ;;  %s2515_s25 = scalar_lea.vmem [#allocation10], %s2359_s10  ;;  %s1518_s7 = sshll.u32 %s2220_s19, 11 }
  0xa6   : > { %787 = vmatpush1.bf16.msra.mxu0 %v1673_v7  ;;  %1526 = vmatprep.subr.bf16.mxu1 %v1704_v20  ;;  %v435_v39 = vpack.c.bf16 %v396_v37, %v395_v36  ;;  %v379_v41 = vld [vmem:[%s2363_s24] sm:$0xff]  ;;  %v1701_v43 = vld [vmem:[#allocation8 + $0x10c] ss:$12 sps:$4 sm:$0xff]   ;;  %v397_v44 = vld [vmem:[%s2371_s27 + $0x10] sm:$0xff]  ;;  %v509_v37 = vlaneseq  ;;  %s1281_s14 = sshll.u32 %s2466_s21, 4  ;;  %s2788_s18 = sld [smem:[#allocation25_spill]]  ;;  %s2642_s14 = int_to_ptr.vmem [resolvable:$true] %s1281_s14 }
  0xa7   : > { %788 = vmatprep.subr.bf16.mxu0 %v1674_v8  ;;  %v398_v45 = vld [vmem:[%s2371_s27 + $0x18] sm:$0xff]  ;;  %v427_v46 = vpack.c.bf16 %v380_v42, %v379_v41  ;;  %v1703_v47 = vld [vmem:[#allocation8 + $0x108] ss:$12 sps:$4 sm:$0xff]   ;;  %v1706_v49 = vld [vmem:[#allocation8 + $0x124] ss:$12 sps:$4 sm:$0xff]   ;;  %s1252_s16 = scalar_lea.sflag [#allocation12], %s2356_s17 }
  0xa8   : > { %812 = vmatprep.mubr.bf16.mxu0 %v435_v39  ;;  %925 = vmatprep.mubr.bf16.mxu1 %v435_v39  ;;  %v436_v48 = vpack.c.bf16 %v398_v45, %v397_v44  ;;  %v1708_v50 = vld [vmem:[#allocation8 + $0x120] ss:$12 sps:$4 sm:$0xff]   ;;  %v381_v51 = vld [vmem:[%s2363_s24 + $0x10] sm:$0xff]  ;;  %v382_v52 = vld [vmem:[%s2363_s24 + $0x18] sm:$0xff]  ;;  %v510_v39 = vshrl.u32 %v509_v37, 7  ;;  %s1972_s29 = scalar_lea.vmem %s2642_s14, 2048 }
  0xa9   : > { %1527 = vmatpush3.bf16.msra.mxu1 %v1705_v21  ;;  %v1711_v53 = vld [vmem:[#allocation8 + $0x13c] ss:$12 sps:$4 sm:$0xff]   ;;  %v399_v54 = vld [vmem:[%s2371_s27 + $0x20] sm:$0xff]  ;;  %v428_v56 = vpack.c.bf16 %v382_v52, %v381_v51  ;;  %v1721_v63 = vld [vmem:[#allocation8 + $0x16c] ss:$12 sps:$4 sm:$0xff]   ;;  %p1973_p4 = scmp.ne.s32.totalorder %s2642_s14, %s1972_s29  ;;  %p2789_p9 = scmp.ne.s32.totalorder %s2774_s12, 0 }
  0xaa   : > { %789 = vmatpush1.bf16.msra.mxu0 %v1676_v11  ;;  %1528 = vmatprep.subr.bf16.mxu1 %v1709_v24  ;;  %v400_v55 = vld [vmem:[%s2371_s27 + $0x28] sm:$0xff]  ;;  %v1713_v57 = vld [vmem:[#allocation8 + $0x138] ss:$12 sps:$4 sm:$0xff]   ;;  %v1716_v59 = vld [vmem:[#allocation8 + $0x154] ss:$12 sps:$4 sm:$0xff]   ;;  %v519_v42 = vsub.s32 2, %v510_v39 }
  0xab   : > { %790 = vmatprep.subr.bf16.mxu0 %v1677_v12  ;;  %v437_v58 = vpack.c.bf16 %v400_v55, %v399_v54  ;;  %v1718_v60 = vld [vmem:[#allocation8 + $0x150] ss:$12 sps:$4 sm:$0xff]   ;;  %v383_v61 = vld [vmem:[%s2363_s24 + $0x20] sm:$0xff]  ;;  %v384_v62 = vld [vmem:[%s2363_s24 + $0x28] sm:$0xff]  ;;  %p1974_p12 = pnand %p1973_p4, %p2789_p9  ;;  %s2088_s30 = smov [#allocation11]  }
  0xac   : > { %v401_v0 = vld [vmem:[%s2371_s27 + $0x30] sm:$0xff]  ;;  %v402_v1 = vld [vmem:[%s2371_s27 + $0x38] sm:$0xff]  ;;  %v429_v2 = vpack.c.bf16 %v384_v62, %v383_v61  ;;  %v403_v7 = vld [vmem:[%s2371_s27 + $0x40] sm:$0xff]  ;;  %s2640_s1 = scalar_lea.hbm %s2788_s18, %s1518_s7  ;;  %s1976_s20 = sshll.u32 %s2088_s30, 4  ;;  %s1977_s20 = int_to_ptr.vmem [resolvable:$false] %s1976_s20 }
  0xad   : > { %1529 = vmatpush3.bf16.msra.mxu1 %v1710_v25  ;;  %v1723_v3 = vld [vmem:[#allocation8 + $0x168] ss:$12 sps:$4 sm:$0xff]   ;;  %v438_v4 = vpack.c.bf16 %v402_v1, %v401_v0  ;;  %v386_v6 = vld [vmem:[%s2363_s24 + $0x38] sm:$0xff]  ;;  %v387_v11 = vld [vmem:[%s2363_s24 + $0x40] sm:$0xff]  ;;  %p1975_p6 = pneg %p1974_p12  ;;  %s1978_s9 = scalar_lea.vmem %s1977_s20, 4096 }
  0xae   : > { %791 = vmatpush1.bf16.msra.mxu0 %v1679_v15  ;;  %1530 = vmatprep.subr.bf16.mxu1 %v1714_v27  ;;  %v385_v5 = vld [vmem:[%s2363_s24 + $0x30] sm:$0xff]  ;;  %v404_v8 = vld [vmem:[%s2371_s27 + $0x48] sm:$0xff]  ;;  %v406_v14 = vld [vmem:[%s2371_s27 + $0x58] sm:$0xff]  ;;  %p1979_p3 = scmp.lt.s32.totalorder %s2642_s14, %s1977_s20  ;;  %p1980_p5 = scmp.lt.s32.totalorder %s1978_s9, %s1972_s29 }
  0xaf   : > { %792 = vmatprep.subr.bf16.mxu0 %v1680_v16  ;;  %v430_v9 = vpack.c.bf16 %v386_v6, %v385_v5  ;;  %v439_v10 = vpack.c.bf16 %v404_v8, %v403_v7  ;;  %v388_v12 = vld [vmem:[%s2363_s24 + $0x48] sm:$0xff]  ;;  %v405_v13 = vld [vmem:[%s2371_s27 + $0x50] sm:$0xff]  ;;  %v390_v18 = vld [vmem:[%s2363_s24 + $0x58] sm:$0xff] }
  0xb0   : > { %v431_v15 = vpack.c.bf16 %v388_v12, %v387_v11  ;;  %v440_v16 = vpack.c.bf16 %v406_v14, %v405_v13  ;;  %v389_v17 = vld [vmem:[%s2363_s24 + $0x50] sm:$0xff]  ;;  %v408_v20 = vld [vmem:[%s2371_s27 + $0x68] sm:$0xff]  ;;  %p1981_p7 = por %p1980_p5, %p1979_p3 }
  0xb1   : > { %1531 = vmatpush3.bf16.msra.mxu1 %v1715_v30  ;;  %v432_v21 = vpack.c.bf16 %v390_v18, %v389_v17  ;;  %v392_v24 = vld [vmem:[%s2363_s24 + $0x68] sm:$0xff]  ;;  %v409_v25 = vld [vmem:[%s2371_s27 + $0x70] sm:$0xff]  ;;  %v394_v30 = vld [vmem:[%s2363_s24 + $0x78] sm:$0xff] }
  0xb2   : > { %793 = vmatpush1.bf16.msra.mxu0 %v1682_v19  ;;  %1532 = vmatprep.subr.bf16.mxu1 %v1719_v31  ;;  %v407_v19 = vld [vmem:[%s2371_s27 + $0x60] sm:$0xff]  ;;  %p1982_p11 = pnand %p1981_p7, %p1975_p6 }
  0xb3   : > { %794 = vmatprep.subr.bf16.mxu0 %v1683_v22  ;;  %v441_v22 = vpack.c.bf16 %v408_v20, %v407_v19 }
  0xb5   : > { %1533 = vmatpush3.bf16.msra.mxu1 %v1720_v34 }
  0xb6   : > { %795 = vmatpush1.bf16.msra.mxu0 %v1685_v23  ;;  %1534 = vmatprep.subr.bf16.mxu1 %v1724_v35  ;;  %v391_v23 = vld [vmem:[%s2363_s24 + $0x60] sm:$0xff] }
  0xb7   : > { %796 = vmatprep.subr.bf16.mxu0 %v1686_v26  ;;  %v410_v26 = vld [vmem:[%s2371_s27 + $0x78] sm:$0xff]  ;;  %v433_v27 = vpack.c.bf16 %v392_v24, %v391_v23 }
  0xb9   : > { %1535 = vmatpush3.bf16.msra.mxu1 %v1725_v40 }
  0xba   : > { %797 = vmatpush1.bf16.msra.mxu0 %v1688_v28  ;;  %v442_v28 = vpack.c.bf16 %v410_v26, %v409_v25 }
  0xbb   : > { %798 = vmatprep.subr.bf16.mxu0 %v1691_v29  ;;  %v393_v29 = vld [vmem:[%s2363_s24 + $0x70] sm:$0xff] }
  0xbc   : > { %926 = vmatmul.mubr.bf16.vlgmr.msra.gmra.mrb[0].mxu1 %v427_v46  ;;  %v434_v31 = vpack.c.bf16 %v394_v30, %v393_v29 }
  0xbd   : > { %933 = vmatprep.mubr.bf16.mxu1 %v436_v48 }
  0xbe   : > { %799 = vmatpush1.bf16.msra.mxu0 %v1693_v32 }
  0xbf   : > { %800 = vmatprep.subr.bf16.mxu0 %v1696_v33 }
  0xc2   : > { %801 = vmatpush1.bf16.msra.mxu0 %v1698_v38 }
  0xc3   : > { %802 = vmatprep.subr.bf16.mxu0 %v1701_v43 }
  0xc4   : > { %934 = vmatmul.mubr.bf16.gmra.mrb[4].mxu1 %v428_v56 }
  0xc5   : > { %941 = vmatprep.mubr.bf16.mxu1 %v437_v58 }
  0xc6   : > { %803 = vmatpush1.bf16.msra.mxu0 %v1703_v47  ;;  %v507_v47 = vld [vmem:[%s2738_s4] sm:$0x7] }
  0xc7   : > { %804 = vmatprep.subr.bf16.mxu0 %v1706_v49  ;;  %v515_v49 = vsub.s32 1, %v510_v39 }
  0xc9   : > { %v2423_v54 = vrot.slane %v507_v47, %v515_v49 }
  0xca   : > { %805 = vmatpush1.bf16.msra.mxu0 %v1708_v50  ;;  %v2419_v50 = vrot.slane %v507_v47, %v519_v42 }
  0xcb   : > { %806 = vmatprep.subr.bf16.mxu0 %v1711_v53 }
  0xcc   : > { %942 = vmatmul.mubr.bf16.gmra.mrb[8].mxu1 %v429_v2 }
  0xcd   : > { %949 = vmatprep.mubr.bf16.mxu1 %v438_v4 }
  0xce   : > { %807 = vmatpush1.bf16.msra.mxu0 %v1713_v57 }
  0xcf   : > { %808 = vmatprep.subr.bf16.mxu0 %v1716_v59 }
  0xd2   : > { %809 = vmatpush1.bf16.msra.mxu0 %v1718_v60 }
  0xd3   : > { %810 = vmatprep.subr.bf16.mxu0 %v1721_v63 }
  0xd4   : > { %950 = vmatmul.mubr.bf16.gmra.mrb[12].mxu1 %v430_v9 }
  0xd5   : > { %957 = vmatprep.mubr.bf16.mxu1 %v439_v10 }
  0xd6   : > { %811 = vmatpush1.bf16.msra.mxu0 %v1723_v3 }
  0xd9   : > { %813 = vmatmul.mubr.bf16.vlgmr.msra.gmra.mrb[0].mxu0 %v427_v46 }
  0xda   : > { %822 = vmatprep.mubr.bf16.mxu0 %v436_v48  ;;  %v511_v48 = vsub.s32 0, %v510_v39 }
  0xdc   : > { %958 = vmatmul.mubr.bf16.gmra.mrb[16].mxu1 %v431_v15  ;;  %v2421_v52 = vrot.slane %v507_v47, %v511_v48  ;;  %v411_v48 = vld [vmem:[%s2378_s5] sm:$0xff] }
  0xdd   : > { %965 = vmatprep.mubr.bf16.mxu1 %v440_v16 }
  0xe1   : > { %823 = vmatmul.mubr.bf16.gmra.mrb[4].mxu0 %v428_v56 }
  0xe2   : > { %832 = vmatprep.mubr.bf16.mxu0 %v437_v58 }
  0xe4   : > { %966 = vmatmul.mubr.bf16.gmra.mrb[20].mxu1 %v432_v21 }
  0xe5   : > { %973 = vmatprep.mubr.bf16.mxu1 %v441_v22 }
  0xe9   : > { %833 = vmatmul.mubr.bf16.gmra.mrb[8].mxu0 %v429_v2 }
  0xea   : > { %842 = vmatprep.mubr.bf16.mxu0 %v438_v4 }
  0xec   : > { %974 = vmatmul.mubr.bf16.gmra.mrb[24].mxu1 %v433_v27 }
  0xed   : > { %981 = vmatprep.mubr.bf16.mxu1 %v442_v28 }
  0xf1   : > { %843 = vmatmul.mubr.bf16.gmra.mrb[12].mxu0 %v430_v9 }
  0xf2   : > { %852 = vmatprep.mubr.bf16.mxu0 %v439_v10 }
  0xf4   : > { %982 = vmatmul.mubr.bf16.gmra.mrb[28].mxu1 %v434_v31 }
  0xf9   : > { %853 = vmatmul.mubr.bf16.gmra.mrb[16].mxu0 %v431_v15 }
  0xfa   : > { %862 = vmatprep.mubr.bf16.mxu0 %v440_v16 }
 0x101   : > { %863 = vmatmul.mubr.bf16.gmra.mrb[20].mxu0 %v432_v21 }
 0x102   : > { %872 = vmatprep.mubr.bf16.mxu0 %v441_v22 }
 0x109   : > { %873 = vmatmul.mubr.bf16.gmra.mrb[24].mxu0 %v433_v27 }
 0x10a   : > { %882 = vmatprep.mubr.bf16.mxu0 %v442_v28 }
 0x111   : > { %883 = vmatmul.mubr.bf16.gmra.mrb[28].mxu0 %v434_v31 }
 0x18f   : > { %v1536_v32 = vpop.f32.mrb[0].mxu1 }
 0x190   : > { %v1537_v33 = vpop.f32.mrb[1].mxu1 }
 0x191   : > { %v1538_v34 = vadd.f32 %v1537_v33, %v1536_v32  ;;  %v1539_v35 = vpop.f32.mrb[2].mxu1 }
 0x192   : > { %v1540_v36 = vpop.f32.mrb[3].mxu1 }
 0x193   : > { %v1541_v38 = vadd.f32 %v1540_v36, %v1539_v35  ;;  %v928_v55 = vadd.f32 %v1538_v34, %v2419_v50 }
 0x195   : > { %v931_v58 = vadd.f32 %v1541_v38, %v2419_v50  ;;  %1726 = vtanh.f32 %v928_v55 }
 0x197   : > { %v1542_v40 = vpop.f32.mrb[4].mxu1  ;;  %1728 = vtanh.f32 %v931_v58 }
 0x198   : > { %v1543_v41 = vpop.f32.mrb[5].mxu1 }
 0x199   : > { %v1544_v43 = vadd.f32 %v1543_v41, %v1542_v40  ;;  %v1545_v44 = vpop.f32.mrb[6].mxu1 }
 0x19a   : > { %v1546_v45 = vpop.f32.mrb[7].mxu1 }
 0x19b   : > { %v1547_v46 = vadd.f32 %v1546_v45, %v1545_v44  ;;  %v936_v61 = vadd.f32 %v1544_v43, %v2419_v50 }
 0x19d   : > { %1730 = vtanh.f32 %v936_v61  ;;  %v939_v10 = vadd.f32 %v1547_v46, %v2419_v50 }
 0x19f   : > { %v1548_v51 = vpop.f32.mrb[8].mxu1  ;;  %v1727_v28 = vpop.eup %1726 }
 0x1a0   : > { %v1549_v53 = vpop.f32.mrb[9].mxu1 }
 0x1a1   : > { %v1550_v56 = vadd.f32 %v1549_v53, %v1548_v51  ;;  %v1551_v57 = vpop.f32.mrb[10].mxu1  ;;  %v1729_v32 = vpop.eup %1728 }
 0x1a2   : > { %v1552_v59 = vpop.f32.mrb[11].mxu1 }
 0x1a3   : > { %v1553_v62 = vadd.f32 %v1552_v59, %v1551_v57  ;;  %v944_v13 = vadd.f32 %v1550_v56, %v2419_v50 }
 0x1a5   : > { %v947_v16 = vadd.f32 %v1553_v62, %v2419_v50  ;;  %v412_v62 = vld [vmem:[%s2378_s5 + $0x8] sm:$0xff] }
 0x1a7   : > { %v1554_v8 = vpop.f32.mrb[12].mxu1  ;;  %v2441_v36 = vpop.eup %1730 }
 0x1a8   : > { %v1555_v11 = vpop.f32.mrb[13].mxu1 }
 0x1a9   : > { %v1556_v14 = vadd.f32 %v1555_v11, %v1554_v8  ;;  %v1557_v15 = vpop.f32.mrb[14].mxu1 }
 0x1aa   : > { %v1558_v17 = vpop.f32.mrb[15].mxu1 }
 0x1ab   : > { %v952_v19 = vadd.f32 %v1556_v14, %v2419_v50  ;;  %v1559_v20 = vadd.f32 %v1558_v17, %v1557_v15 }
 0x1ac   : > { %v814_v60 = vpop.f32.mrb[0].mxu0 }
 0x1ad   : > { %v815_v63 = vadd.f32 %v814_v60, %v2421_v52  ;;  %v816_v0 = vpop.f32.mrb[1].mxu0  ;;  %v955_v34 = vadd.f32 %v1559_v20, %v2419_v50 }
 0x1ae   : > { %v817_v1 = vadd.f32 %v816_v0, %v2423_v54  ;;  %v818_v2 = vpop.f32.mrb[2].mxu0 }
 0x1af   : > { %v990_v3 = vmul.f32 0.5, %v815_v63  ;;  %v819_v4 = vadd.f32 %v818_v2, %v2421_v52  ;;  %v820_v5 = vpop.f32.mrb[3].mxu0  ;;  %v1560_v31 = vpop.f32.mrb[16].mxu1 }
 0x1b0   : > { %v991_v6 = vmul.f32 0.5, %v817_v1  ;;  %v821_v7 = vadd.f32 %v820_v5, %v2423_v54  ;;  %v1561_v35 = vpop.f32.mrb[17].mxu1 }
 0x1b1   : > { %1732 = vtanh.f32 %v990_v3  ;;  %v992_v9 = vmul.f32 0.5, %v819_v4  ;;  %v1562_v38 = vadd.f32 %v1561_v35, %v1560_v31  ;;  %v1563_v39 = vpop.f32.mrb[18].mxu1 }
 0x1b2   : > { %1734 = vtanh.f32 %v991_v6  ;;  %v993_v12 = vmul.f32 0.5, %v821_v7  ;;  %v1564_v41 = vpop.f32.mrb[19].mxu1 }
 0x1b3   : > { %1736 = vtanh.f32 %v992_v9  ;;  %v960_v45 = vadd.f32 %v1562_v38, %v2419_v50  ;;  %v1565_v46 = vadd.f32 %v1564_v41, %v1563_v39 }
 0x1b4   : > { %1738 = vtanh.f32 %v993_v12  ;;  %v824_v18 = vpop.f32.mrb[4].mxu0 }
 0x1b5   : > { %v825_v21 = vadd.f32 %v824_v18, %v2421_v52  ;;  %v826_v22 = vpop.f32.mrb[5].mxu0  ;;  %1740 = vtanh.f32 %v939_v10  ;;  %v963_v17 = vadd.f32 %v1565_v46, %v2419_v50 }
 0x1b6   : > { %v827_v23 = vadd.f32 %v826_v22, %v2423_v54  ;;  %v828_v24 = vpop.f32.mrb[6].mxu0  ;;  %1742 = vtanh.f32 %v944_v13 }
 0x1b7   : > { %v994_v25 = vmul.f32 0.5, %v825_v21  ;;  %v829_v26 = vadd.f32 %v828_v24, %v2421_v52  ;;  %v830_v27 = vpop.f32.mrb[7].mxu0  ;;  %1744 = vtanh.f32 %v947_v16  ;;  %v1566_v8 = vpop.f32.mrb[20].mxu1 }
 0x1b8   : > { %v995_v29 = vmul.f32 0.5, %v827_v23  ;;  %v831_v30 = vadd.f32 %v830_v27, %v2423_v54  ;;  %1746 = vtanh.f32 %v952_v19  ;;  %v1567_v13 = vpop.f32.mrb[21].mxu1 }
 0x1b9   : > { %1748 = vtanh.f32 %v994_v25  ;;  %v996_v33 = vmul.f32 0.5, %v829_v26  ;;  %v1569_v18 = vpop.f32.mrb[22].mxu1  ;;  %v1568_v22 = vadd.f32 %v1567_v13, %v1566_v8 }
 0x1ba   : > { %1750 = vtanh.f32 %v995_v29  ;;  %v997_v37 = vmul.f32 0.5, %v831_v30  ;;  %v1570_v23 = vpop.f32.mrb[23].mxu1  ;;  %v413_v30 = vld [vmem:[%s2378_s5 + $0x10] sm:$0xff] }
 0x1bb   : > { %v1733_v40 = vpop.eup %1732  ;;  %1752 = vtanh.f32 %v996_v33  ;;  %v1571_v27 = vadd.f32 %v1570_v23, %v1569_v18 }
 0x1bc   : > { %v1735_v42 = vpop.eup %1734  ;;  %v1054_v43 = vmul.f32 0.5, %v1733_v40  ;;  %1754 = vtanh.f32 %v997_v37  ;;  %v834_v44 = vpop.f32.mrb[8].mxu0 }
 0x1bd   : > { %v1737_v47 = vpop.eup %1736  ;;  %v1055_v49 = vmul.f32 0.5, %v1735_v42  ;;  %v835_v51 = vadd.f32 %v834_v44, %v2421_v52  ;;  %v836_v53 = vpop.f32.mrb[9].mxu0  ;;  %1756 = vtanh.f32 %v955_v34  ;;  %v414_v42 = vld [vmem:[%s2378_s5 + $0x18] sm:$0xff] }
 0x1be   : > { %v1739_v55 = vpop.eup %1738  ;;  %v2446_v56 = vadd.f32 0.5, %v1054_v43  ;;  %v1056_v57 = vmul.f32 0.5, %v1737_v47  ;;  %v837_v58 = vadd.f32 %v836_v53, %v2423_v54  ;;  %v838_v59 = vpop.f32.mrb[10].mxu0  ;;  %1758 = vtanh.f32 %v960_v45 }
 0x1bf   : > { %v2449_v60 = vpop.eup %1740  ;;  %v1087_v61 = vadd.f32 0.5, %v1055_v49  ;;  %v1057_v63 = vmul.f32 0.5, %v1739_v55  ;;  %v998_v0 = vmul.f32 0.5, %v835_v51  ;;  %v839_v1 = vadd.f32 %v838_v59, %v2421_v52  ;;  %v840_v2 = vpop.f32.mrb[11].mxu0 }
 0x1c0   : > { %v2453_v3 = vpop.eup %1742  ;;  %v1134_v4 = vmul.f32 %v2446_v56, %v411_v48  ;;  %v2456_v5 = vadd.f32 0.5, %v1056_v57  ;;  %v999_v6 = vmul.f32 0.5, %v837_v58  ;;  %v841_v7 = vadd.f32 %v840_v2, %v2423_v54  ;;  %v1572_v53 = vpop.f32.mrb[24].mxu1 }
 0x1c1   : > { %v2459_v9 = vpop.eup %1744  ;;  %v1150_v10 = vmul.f32 %v1727_v28, %v1087_v61  ;;  %v1089_v11 = vadd.f32 0.5, %v1057_v63  ;;  %1760 = vtanh.f32 %v998_v0  ;;  %v1000_v12 = vmul.f32 0.5, %v839_v1  ;;  %v1573_v59 = vpop.f32.mrb[25].mxu1 }
 0x1c2   : > { %v2461_v14 = vpop.eup %1746  ;;  %v1135_v15 = vmul.f32 %v2456_v5, %v412_v62  ;;  %1762 = vtanh.f32 %v999_v6  ;;  %v1001_v16 = vmul.f32 0.5, %v841_v7  ;;  %v968_v63 = vadd.f32 %v1568_v22, %v2419_v50  ;;  %v1575_v0 = vpop.f32.mrb[26].mxu1 }
 0x1c3   : > { %v1749_v19 = vpop.eup %1748  ;;  %v1166_v20 = vadd.f32 %v1150_v10, %v1134_v4  ;;  %v1151_v21 = vmul.f32 %v1729_v32, %v1089_v11  ;;  %1764 = vtanh.f32 %v1000_v12  ;;  %v1576_v7 = vpop.f32.mrb[27].mxu1  ;;  %v2490_v12 = vadd.f32 %v1573_v59, %v1572_v53 }
 0x1c4   : > { %v1751_v24 = vpop.eup %1750  ;;  %v1058_v25 = vmul.f32 0.5, %v1749_v19  ;;  %1766 = vtanh.f32 %v1001_v16  ;;  %v844_v26 = vpop.f32.mrb[12].mxu0  ;;  %v2492_v13 = vadd.f32 %v1576_v7, %v1575_v0  ;;  %v417_v0 = vld [vmem:[%s2378_s5 + $0x30] sm:$0xff] }
 0x1c5   : > { %v1753_v28 = vpop.eup %1752  ;;  %1768 = vtanh.f32 %v1166_v20  ;;  %1230 = vst [vmem:[%s2466_s21] sm:$0xff] %v1166_v20  ;;  %v1167_v29 = vadd.f32 %v1151_v21, %v1135_v15  ;;  %v1059_v31 = vmul.f32 0.5, %v1751_v24  ;;  %v845_v32 = vadd.f32 %v844_v26, %v2421_v52  ;;  %v846_v33 = vpop.f32.mrb[13].mxu0 }
 0x1c6   : > { %v1755_v34 = vpop.eup %1754  ;;  %v2471_v35 = vadd.f32 0.5, %v1058_v25  ;;  %v1060_v37 = vmul.f32 0.5, %v1753_v28  ;;  %v847_v38 = vadd.f32 %v846_v33, %v2423_v54  ;;  %v848_v39 = vpop.f32.mrb[14].mxu0  ;;  %1770 = vtanh.f32 %v963_v17  ;;  %v415_v17 = vld [vmem:[%s2378_s5 + $0x20] sm:$0xff] }
 0x1c7   : > { %v2474_v40 = vpop.eup %1756  ;;  %1772 = vtanh.f32 %v1167_v29  ;;  %1231 = vst [vmem:[%s2466_s21 + $0x8] sm:$0xff] %v1167_v29  ;;  %v1091_v41 = vadd.f32 0.5, %v1059_v31  ;;  %v1061_v43 = vmul.f32 0.5, %v1755_v34  ;;  %v1002_v44 = vmul.f32 0.5, %v845_v32  ;;  %v850_v45 = vpop.f32.mrb[15].mxu0 }
 0x1c8   : > { %v2478_v46 = vpop.eup %1758  ;;  %v1136_v47 = vmul.f32 %v2471_v35, %v413_v30  ;;  %v2481_v48 = vadd.f32 0.5, %v1060_v37  ;;  %v1003_v49 = vmul.f32 0.5, %v847_v38  ;;  %v849_v51 = vadd.f32 %v848_v39, %v2421_v52  ;;  %v2508_v38 = vpop.f32.mrb[28].mxu1 }
 0x1c9   : > { %v1152_v55 = vmul.f32 %v2441_v36, %v1091_v41  ;;  %v1093_v57 = vadd.f32 0.5, %v1061_v43  ;;  %1774 = vtanh.f32 %v1002_v44  ;;  %v851_v58 = vadd.f32 %v850_v45, %v2423_v54  ;;  %v2512_v44 = vpop.f32.mrb[29].mxu1 }
 0x1ca   : > { %v1137_v61 = vmul.f32 %v2481_v48, %v414_v42  ;;  %1776 = vtanh.f32 %v1003_v49  ;;  %v1004_v62 = vmul.f32 0.5, %v849_v51  ;;  %v971_v36 = vadd.f32 %v1571_v27, %v2419_v50  ;;  %v416_v27 = vld [vmem:[%s2378_s5 + $0x28] sm:$0xff] }
 0x1cb   : > { %v1761_v1 = vpop.eup %1760  ;;  %v1168_v2 = vadd.f32 %v1152_v55, %v1136_v47  ;;  %v1153_v4 = vmul.f32 %v2449_v60, %v1093_v57  ;;  %v1005_v6 = vmul.f32 0.5, %v851_v58 }
 0x1cc   : > { %v1763_v8 = vpop.eup %1762  ;;  %v1062_v10 = vmul.f32 0.5, %v1761_v1  ;;  %1778 = vtanh.f32 %v1004_v62  ;;  %v854_v11 = vpop.f32.mrb[16].mxu0 }
 0x1cd   : > { %v1765_v15 = vpop.eup %1764  ;;  %1780 = vtanh.f32 %v1168_v2  ;;  %1232 = vst [vmem:[%s2466_s21 + $0x10] sm:$0xff] %v1168_v2  ;;  %v1169_v16 = vadd.f32 %v1153_v4, %v1137_v61  ;;  %v1063_v60 = vmul.f32 0.5, %v1763_v8  ;;  %v855_v18 = vadd.f32 %v854_v11, %v2421_v52  ;;  %v856_v19 = vpop.f32.mrb[17].mxu0 }
 0x1ce   : > { %v1767_v20 = vpop.eup %1766  ;;  %v2497_v21 = vadd.f32 0.5, %v1062_v10  ;;  %v1064_v22 = vmul.f32 0.5, %v1765_v15  ;;  %1782 = vtanh.f32 %v1005_v6  ;;  %v857_v23 = vadd.f32 %v856_v19, %v2423_v54  ;;  %v858_v24 = vpop.f32.mrb[18].mxu0  ;;  %v418_v19 = vld [vmem:[%s2378_s5 + $0x38] sm:$0xff] }
 0x1cf   : > { %v1769_v25 = vpop.eup %1768  ;;  %1784 = vtanh.f32 %v1169_v16  ;;  %1233 = vst [vmem:[%s2466_s21 + $0x18] sm:$0xff] %v1169_v16  ;;  %v1095_v26 = vadd.f32 0.5, %v1063_v60  ;;  %v1065_v28 = vmul.f32 0.5, %v1767_v20  ;;  %v1006_v29 = vmul.f32 0.5, %v855_v18  ;;  %v860_v30 = vpop.f32.mrb[19].mxu0 }
 0x1d0   : > { %v2502_v31 = vpop.eup %1770  ;;  %v1198_v32 = vmul.f32 %v1769_v25, %v2446_v56  ;;  %v1138_v33 = vmul.f32 %v2497_v21, %v415_v17  ;;  %v2506_v34 = vadd.f32 0.5, %v1064_v22  ;;  %v1007_v37 = vmul.f32 0.5, %v857_v23 }
 0x1d1   : > { %v1773_v39 = vpop.eup %1772  ;;  %v1154_v41 = vmul.f32 %v2453_v3, %v1095_v26  ;;  %v1097_v42 = vadd.f32 0.5, %v1065_v28  ;;  %1786 = vtanh.f32 %v1006_v29  ;;  %v859_v43 = vadd.f32 %v858_v24, %v2421_v52  ;;  %v2521_v3 = vpop.f32.mrb[30].mxu1 }
 0x1d2   : > { %1214 = vst [vmem:[%s2515_s25] sm:$0xff] %v1198_v32  ;;  %v1199_v56 = vmul.f32 %v1773_v39, %v2456_v5  ;;  %v1139_v45 = vmul.f32 %v2506_v34, %v416_v27  ;;  %1788 = vtanh.f32 %v1007_v37  ;;  %v861_v47 = vadd.f32 %v860_v30, %v2423_v54  ;;  %v2524_v57 = vpop.f32.mrb[31].mxu1 }
 0x1d3   : > { %v1775_v49 = vpop.eup %1774  ;;  %v1170_v51 = vadd.f32 %v1154_v41, %v1138_v33  ;;  %v1155_v53 = vmul.f32 %v2459_v9, %v1097_v42  ;;  %v1008_v55 = vmul.f32 0.5, %v859_v43  ;;  %1790 = vtanh.f32 %v968_v63  ;;  %v419_v43 = vld [vmem:[%s2378_s5 + $0x40] sm:$0xff] }
 0x1d4   : > { %v1777_v58 = vpop.eup %1776  ;;  %1215 = vst [vmem:[%s2515_s25 + $0x8] sm:$0xff] %v1199_v56  ;;  %v1066_v5 = vmul.f32 0.5, %v1775_v49  ;;  %v1009_v59 = vmul.f32 0.5, %v861_v47  ;;  %v864_v61 = vpop.f32.mrb[20].mxu0  ;;  %1792 = vtanh.f32 %v971_v36  ;;  %v976_v36 = vadd.f32 %v2490_v12, %v2419_v50 }
 0x1d5   : > { %1794 = vtanh.f32 %v1170_v51  ;;  %1234 = vst [vmem:[%s2466_s21 + $0x20] sm:$0xff] %v1170_v51  ;;  %v1171_v62 = vadd.f32 %v1155_v53, %v1139_v45  ;;  %v1067_v1 = vmul.f32 0.5, %v1777_v58  ;;  %v865_v2 = vadd.f32 %v864_v61, %v2421_v52  ;;  %v866_v4 = vpop.f32.mrb[21].mxu0 }
 0x1d6   : > { %v1779_v9 = vpop.eup %1778  ;;  %v2530_v63 = vadd.f32 0.5, %v1066_v5  ;;  %1796 = vtanh.f32 %v1008_v55  ;;  %v867_v6 = vadd.f32 %v866_v4, %v2423_v54  ;;  %v868_v7 = vpop.f32.mrb[22].mxu0  ;;  %v1580_v55 = vadd.f32 %v2512_v44, %v2508_v38 }
 0x1d7   : > { %v1781_v8 = vpop.eup %1780  ;;  %1798 = vtanh.f32 %v1171_v62  ;;  %1235 = vst [vmem:[%s2466_s21 + $0x28] sm:$0xff] %v1171_v62  ;;  %v1099_v10 = vadd.f32 0.5, %v1067_v1  ;;  %v1068_v11 = vmul.f32 0.5, %v1779_v9  ;;  %v1010_v15 = vmul.f32 0.5, %v865_v2  ;;  %v870_v16 = vpop.f32.mrb[23].mxu0 }
 0x1d8   : > { %v1783_v17 = vpop.eup %1782  ;;  %v1200_v60 = vmul.f32 %v1781_v8, %v2471_v35  ;;  %v1140_v18 = vmul.f32 %v2530_v63, %v417_v0  ;;  %1800 = vtanh.f32 %v1009_v59  ;;  %v1011_v20 = vmul.f32 0.5, %v867_v6  ;;  %v420_v8 = vld [vmem:[%s2378_s5 + $0x48] sm:$0xff] }
 0x1d9   : > { %v1785_v22 = vpop.eup %1784  ;;  %v2539_v23 = vadd.f32 0.5, %v1068_v11  ;;  %v1156_v12 = vmul.f32 %v2461_v14, %v1099_v10  ;;  %v1069_v24 = vmul.f32 0.5, %v1783_v17  ;;  %1802 = vtanh.f32 %v1010_v15 }
 0x1da   : > { %1216 = vst [vmem:[%s2515_s25 + $0x10] sm:$0xff] %v1200_v60  ;;  %v1201_v25 = vmul.f32 %v1785_v22, %v2481_v48  ;;  %1804 = vtanh.f32 %v1011_v20  ;;  %v869_v26 = vadd.f32 %v868_v7, %v2421_v52  ;;  %v871_v35 = vadd.f32 %v870_v16, %v2423_v54 }
 0x1db   : > { %v1787_v27 = vpop.eup %1786  ;;  %v1141_v28 = vmul.f32 %v2539_v23, %v418_v19  ;;  %v1172_v29 = vadd.f32 %v1156_v12, %v1140_v18  ;;  %v1101_v30 = vadd.f32 0.5, %v1069_v24  ;;  %v2549_v14 = vadd.f32 %v2492_v13, %v2419_v50  ;;  %v421_v12 = vld [vmem:[%s2378_s5 + $0x50] sm:$0xff] }
 0x1dc   : > { %v1789_v32 = vpop.eup %1788  ;;  %1217 = vst [vmem:[%s2515_s25 + $0x18] sm:$0xff] %v1201_v25  ;;  %v1070_v33 = vmul.f32 0.5, %v1787_v27  ;;  %v1012_v48 = vmul.f32 0.5, %v869_v26  ;;  %v1013_v37 = vmul.f32 0.5, %v871_v35  ;;  %v874_v39 = vpop.f32.mrb[24].mxu0  ;;  %1806 = vtanh.f32 %v976_v36 }
 0x1dd   : > { %v2552_v41 = vpop.eup %1790  ;;  %1808 = vtanh.f32 %v1172_v29  ;;  %1236 = vst [vmem:[%s2466_s21 + $0x30] sm:$0xff] %v1172_v29  ;;  %v1157_v42 = vmul.f32 %v2474_v40, %v1101_v30  ;;  %v1071_v56 = vmul.f32 0.5, %v1789_v32  ;;  %v875_v45 = vadd.f32 %v874_v39, %v2421_v52  ;;  %v876_v47 = vpop.f32.mrb[25].mxu0 }
 0x1de   : > { %v2558_v13 = vpop.eup %1792  ;;  %v2560_v49 = vadd.f32 0.5, %v1070_v33  ;;  %1810 = vtanh.f32 %v1012_v48  ;;  %v877_v51 = vadd.f32 %v876_v47, %v2423_v54  ;;  %v878_v53 = vpop.f32.mrb[26].mxu0  ;;  %v984_v10 = vadd.f32 %v1580_v55, %v2419_v50 }
 0x1df   : > { %v1795_v58 = vpop.eup %1794  ;;  %v1173_v5 = vadd.f32 %v1157_v42, %v1141_v28  ;;  %v1103_v40 = vadd.f32 0.5, %v1071_v56  ;;  %1812 = vtanh.f32 %v1013_v37  ;;  %v1014_v59 = vmul.f32 0.5, %v875_v45  ;;  %v880_v61 = vpop.f32.mrb[27].mxu0 }
 0x1e0   : > { %v1797_v62 = vpop.eup %1796  ;;  %v1202_v0 = vmul.f32 %v1795_v58, %v2497_v21  ;;  %v1142_v1 = vmul.f32 %v2560_v49, %v419_v43  ;;  %v1015_v2 = vmul.f32 0.5, %v877_v51  ;;  %v879_v4 = vadd.f32 %v878_v53, %v2421_v52  ;;  %v422_v51 = vld [vmem:[%s2378_s5 + $0x58] sm:$0xff] }
 0x1e1   : > { %v1799_v9 = vpop.eup %1798  ;;  %1814 = vtanh.f32 %v1173_v5  ;;  %1237 = vst [vmem:[%s2466_s21 + $0x38] sm:$0xff] %v1173_v5  ;;  %v1072_v38 = vmul.f32 0.5, %v1797_v62  ;;  %v1158_v44 = vmul.f32 %v2478_v46, %v1103_v40  ;;  %v881_v6 = vadd.f32 %v880_v61, %v2423_v54 }
 0x1e2   : > { %v1801_v7 = vpop.eup %1800  ;;  %1218 = vst [vmem:[%s2515_s25 + $0x20] sm:$0xff] %v1202_v0  ;;  %v1203_v36 = vmul.f32 %v1799_v9, %v2506_v34  ;;  %1816 = vtanh.f32 %v1014_v59  ;;  %v1016_v21 = vmul.f32 0.5, %v879_v4  ;;  %v1583_v34 = vadd.f32 %v2524_v57, %v2521_v3 }
 0x1e3   : > { %v1803_v11 = vpop.eup %1802  ;;  %v2575_v15 = vadd.f32 0.5, %v1072_v38  ;;  %v1174_v16 = vadd.f32 %v1158_v44, %v1142_v1  ;;  %v1073_v17 = vmul.f32 0.5, %v1801_v7  ;;  %1818 = vtanh.f32 %v1015_v2  ;;  %v423_v2 = vld [vmem:[%s2378_s5 + $0x60] sm:$0xff] }
 0x1e4   : > { %v1805_v46 = vpop.eup %1804  ;;  %1219 = vst [vmem:[%s2515_s25 + $0x28] sm:$0xff] %v1203_v36  ;;  %v1074_v60 = vmul.f32 0.5, %v1803_v11  ;;  %1820 = vtanh.f32 %v1016_v21  ;;  %v1017_v18 = vmul.f32 0.5, %v881_v6  ;;  %v884_v19 = vpop.f32.mrb[28].mxu0  ;;  %v987_v44 = vadd.f32 %v1583_v34, %v2419_v50  ;;  %v424_v21 = vld [vmem:[%s2378_s5 + $0x68] sm:$0xff] }
 0x1e5   : > { %v1143_v20 = vmul.f32 %v2575_v15, %v420_v8  ;;  %1822 = vtanh.f32 %v1174_v16  ;;  %1238 = vst [vmem:[%s2466_s21 + $0x40] sm:$0xff] %v1174_v16  ;;  %v1105_v22 = vadd.f32 0.5, %v1073_v17  ;;  %v1075_v24 = vmul.f32 0.5, %v1805_v46  ;;  %v886_v25 = vpop.f32.mrb[29].mxu0 }
 0x1e6   : > { %v2583_v26 = vpop.eup %1806  ;;  %v2585_v35 = vadd.f32 0.5, %v1074_v60  ;;  %1824 = vtanh.f32 %v1017_v18  ;;  %v885_v27 = vadd.f32 %v884_v19, %v2421_v52  ;;  %v887_v28 = vadd.f32 %v886_v25, %v2423_v54  ;;  %v888_v29 = vpop.f32.mrb[30].mxu0 }
 0x1e7   : > { %v1809_v30 = vpop.eup %1808  ;;  %v1159_v3 = vmul.f32 %v2502_v31, %v1105_v22  ;;  %v1107_v57 = vadd.f32 0.5, %v1075_v24  ;;  %1826 = vtanh.f32 %v2549_v14  ;;  %v889_v32 = vadd.f32 %v888_v29, %v2421_v52  ;;  %v890_v33 = vpop.f32.mrb[31].mxu0  ;;  %v425_v24 = vld [vmem:[%s2378_s5 + $0x70] sm:$0xff] }
 0x1e8   : > { %v1811_v48 = vpop.eup %1810  ;;  %v1204_v37 = vmul.f32 %v1809_v30, %v2530_v63  ;;  %v1144_v39 = vmul.f32 %v2585_v35, %v421_v12  ;;  %v1018_v42 = vmul.f32 0.5, %v885_v27  ;;  %v1019_v43 = vmul.f32 0.5, %v887_v28 }
 0x1e9   : > { %v1813_v56 = vpop.eup %1812  ;;  %v1175_v45 = vadd.f32 %v1159_v3, %v1143_v20  ;;  %v1076_v47 = vmul.f32 0.5, %v1811_v48  ;;  %v1160_v31 = vmul.f32 %v2552_v41, %v1107_v57  ;;  %1828 = vtanh.f32 %v984_v10 }
 0x1ea   : > { %1220 = vst [vmem:[%s2515_s25 + $0x30] sm:$0xff] %v1204_v37  ;;  %v1077_v14 = vmul.f32 0.5, %v1813_v56  ;;  %1830 = vtanh.f32 %v1018_v42  ;;  %v1020_v52 = vmul.f32 0.5, %v889_v32  ;;  %v891_v53 = vadd.f32 %v890_v33, %v2423_v54  ;;  %v426_v33 = vld [vmem:[%s2378_s5 + $0x78] sm:$0xff] }
 0x1eb   : > { %v1815_v63 = vpop.eup %1814  ;;  %1832 = vtanh.f32 %v1175_v45  ;;  %1239 = vst [vmem:[%s2466_s21 + $0x48] sm:$0xff] %v1175_v45  ;;  %v2599_v55 = vadd.f32 0.5, %v1076_v47  ;;  %v1176_v58 = vadd.f32 %v1160_v31, %v1144_v39 }
 0x1ec   : > { %v1817_v5 = vpop.eup %1816  ;;  %v1205_v41 = vmul.f32 %v1815_v63, %v2539_v23  ;;  %v1109_v40 = vadd.f32 0.5, %v1077_v14  ;;  %1834 = vtanh.f32 %v1019_v43  ;;  %v1021_v59 = vmul.f32 0.5, %v891_v53 }
 0x1ed   : > { %v1819_v61 = vpop.eup %1818  ;;  %v1145_v62 = vmul.f32 %v2599_v55, %v422_v51  ;;  %1836 = vtanh.f32 %v1176_v58  ;;  %1240 = vst [vmem:[%s2466_s21 + $0x50] sm:$0xff] %v1176_v58  ;;  %v1078_v54 = vmul.f32 0.5, %v1817_v5 }
 0x1ee   : > { %v1821_v0 = vpop.eup %1820  ;;  %1221 = vst [vmem:[%s2515_s25 + $0x38] sm:$0xff] %v1205_v41  ;;  %v1161_v1 = vmul.f32 %v2558_v13, %v1109_v40  ;;  %v1079_v4 = vmul.f32 0.5, %v1819_v61  ;;  %1838 = vtanh.f32 %v1020_v52 }
 0x1ef   : > { %v1823_v9 = vpop.eup %1822  ;;  %v2607_v23 = vadd.f32 0.5, %v1078_v54  ;;  %v1080_v38 = vmul.f32 0.5, %v1821_v0  ;;  %1840 = vtanh.f32 %v1021_v59 }
 0x1f0   : > { %v1825_v6 = vpop.eup %1824  ;;  %v1206_v7 = vmul.f32 %v1823_v9, %v2560_v49  ;;  %v1177_v36 = vadd.f32 %v1161_v1, %v1145_v62  ;;  %v1111_v8 = vadd.f32 0.5, %v1079_v4 }
 0x1f1   : > { %v1827_v10 = vpop.eup %1826  ;;  %v1146_v13 = vmul.f32 %v2607_v23, %v423_v2  ;;  %v2613_v11 = vadd.f32 0.5, %v1080_v38  ;;  %v1081_v16 = vmul.f32 0.5, %v1825_v6 }
 0x1f2   : > { %1222 = vst [vmem:[%s2515_s25 + $0x40] sm:$0xff] %v1206_v7  ;;  %1842 = vtanh.f32 %v1177_v36  ;;  %1241 = vst [vmem:[%s2466_s21 + $0x58] sm:$0xff] %v1177_v36  ;;  %v1162_v17 = vmul.f32 %v2583_v26, %v1111_v8 }
 0x1f3   : > { %v1829_v50 = vpop.eup %1828  ;;  %v1147_v46 = vmul.f32 %v2613_v11, %v424_v21  ;;  %v1113_v49 = vadd.f32 0.5, %v1081_v16  ;;  %1844 = vtanh.f32 %v987_v44 }
 0x1f4   : > { %v1831_v60 = vpop.eup %1830  ;;  %v1178_v18 = vadd.f32 %v1162_v17, %v1146_v13 }
 0x1f5   : > { %v1833_v19 = vpop.eup %1832  ;;  %v1163_v34 = vmul.f32 %v1827_v10, %v1113_v49  ;;  %v1082_v20 = vmul.f32 0.5, %v1831_v60 }
 0x1f6   : > { %v1835_v22 = vpop.eup %1834  ;;  %v1207_v12 = vmul.f32 %v1833_v19, %v2575_v15  ;;  %1846 = vtanh.f32 %v1178_v18  ;;  %1242 = vst [vmem:[%s2466_s21 + $0x60] sm:$0xff] %v1178_v18 }
 0x1f7   : > { %v1837_v25 = vpop.eup %1836  ;;  %v1179_v26 = vadd.f32 %v1163_v34, %v1147_v46  ;;  %v2622_v27 = vadd.f32 0.5, %v1082_v20  ;;  %v1083_v28 = vmul.f32 0.5, %v1835_v22 }
 0x1f8   : > { %v1839_v29 = vpop.eup %1838  ;;  %1223 = vst [vmem:[%s2515_s25 + $0x48] sm:$0xff] %v1207_v12  ;;  %v1208_v30 = vmul.f32 %v1837_v25, %v2585_v35 }
 0x1f9   : > { %v1841_v3 = vpop.eup %1840  ;;  %1848 = vtanh.f32 %v1179_v26  ;;  %1243 = vst [vmem:[%s2466_s21 + $0x68] sm:$0xff] %v1179_v26  ;;  %v1148_v15 = vmul.f32 %v2622_v27, %v425_v24  ;;  %v1115_v57 = vadd.f32 0.5, %v1083_v28  ;;  %v1084_v32 = vmul.f32 0.5, %v1839_v29 }
 0x1fa   : > { %1224 = vst [vmem:[%s2515_s25 + $0x50] sm:$0xff] %v1208_v30  ;;  %v1085_v48 = vmul.f32 0.5, %v1841_v3 }
 0x1fb   : > { %v1116_v37 = vadd.f32 0.5, %v1084_v32  ;;  %v1164_v39 = vmul.f32 %v1829_v50, %v1115_v57 }
 0x1fc   : > { %v1843_v42 = vpop.eup %1842  ;;  %v1117_v43 = vadd.f32 0.5, %v1085_v48 }
 0x1fd   : > { %v1845_v35 = vpop.eup %1844  ;;  %v1209_v56 = vmul.f32 %v1843_v42, %v2599_v55  ;;  %v1149_v45 = vmul.f32 %v1116_v37, %v426_v33  ;;  %v1180_v47 = vadd.f32 %v1164_v39, %v1148_v15 }
 0x1fe   : > { %v1165_v31 = vmul.f32 %v1845_v35, %v1117_v43 }
 0x1ff   : > { %1225 = vst [vmem:[%s2515_s25 + $0x58] sm:$0xff] %v1209_v56  ;;  %1850 = vtanh.f32 %v1180_v47  ;;  %1244 = vst [vmem:[%s2466_s21 + $0x70] sm:$0xff] %v1180_v47 }
 0x200   : > { %v1847_v51 = vpop.eup %1846  ;;  %v1181_v14 = vadd.f32 %v1165_v31, %v1149_v45 }
 0x201   : > { %v1210_v52 = vmul.f32 %v1847_v51, %v2607_v23 }
 0x202   : > { %1852 = vtanh.f32 %v1181_v14  ;;  %1245 = vst [vmem:[%s2466_s21 + $0x78] sm:$0xff] %v1181_v14 }
 0x203   : > { %v1849_v53 = vpop.eup %1848  ;;  %1226 = vst [vmem:[%s2515_s25 + $0x60] sm:$0xff] %v1210_v52 }
 0x204   : > { %1985 = shalt.err (!%p1982_p11)
}
 0x205   : > { %s1986_s10 = scalar_lea.hbm %s2640_s1, 2048  ;;  %s1990_s28 = scalar_lea.hbm %s2788_s18, 4096 }
 0x206   : > { %p1987_p0 = scmp.ne.s32.totalorder %s2640_s1, %s1986_s10  ;;  %p1991_p10 = scmp.lt.u32.totalorder %s2640_s1, %s2788_s18 }
 0x207   : > { %p1992_p1 = scmp.lt.u32.totalorder %s1990_s28, %s1986_s10  ;;  %p1994_p4 = scmp.lt.u32.totalorder %s1986_s10, %s2640_s1 }
 0x208   : > { %p1988_p13 = pnand %p1987_p0, %p2789_p9 }
 0x209   : > { %p1993_p2 = por %p1992_p1, %p1991_p10 }
 0x20a   : > { %p1989_p8 = pneg %p1988_p13 }
 0x20b   : > { %p1995_p12 = por %p1994_p4, %p1993_p2 }
 0x20d   : > { %p1996_p6 = pnand %p1995_p12, %p1989_p8 }
 0x20f   : > { %1999 = shalt.err (!%p1996_p6)
}
 0x210   : > { %s2089_s5 = smov 128   ;;  %s2090_s26 = smov 8   ;;  %v1211_v63 = vmul.f32 %v1849_v53, %v2613_v11  ;;  %v1851_v55 = vpop.eup %1850 }
 0x211   : > { %1595 = dma.vmem_to_hbm [thread:$0]  (%p2789_p9), %s2642_s14, 2048, %s2640_s1, %s1252_s16, %s2089_s5, %s2089_s5, %s2090_s26   ;;  %v1212_v58 = vmul.f32 %v1851_v55, %v2622_v27  ;;  %v1853_v5 = vpop.eup %1852 }
 0x212   : > { %1227 = vst [vmem:[%s2515_s25 + $0x68] sm:$0xff] %v1211_v63  ;;  %s1265_s6 = sshll.u32 %s2515_s25, 4  ;;  %v1213_v41 = vmul.f32 %v1853_v5, %v1116_v37  ;;  %s2790_s13 = sld [smem:[#allocation24_spill]]  ;;  %s2686_s6 = int_to_ptr.vmem [resolvable:$true] %s1265_s6 }
 0x213   : > { %1228 = vst [vmem:[%s2515_s25 + $0x70] sm:$0xff] %v1212_v58  ;;  %s1247_s14 = scalar_lea.sflag [#allocation4], %s2356_s17  ;;  %s2000_s1 = scalar_lea.vmem %s2686_s6, 2048 }
 0x214   : > { %1229 = vst [vmem:[%s2515_s25 + $0x78] sm:$0xff] %v1213_v41  ;;  %p2001_p3 = scmp.ne.s32.totalorder %s2686_s6, %s2000_s1  ;;  %s2091_s16 = smov [#allocation10]  }
 0x215   : > { %s2004_s30 = sshll.u32 %s2091_s16, 4  ;;  %s2005_s30 = int_to_ptr.vmem [resolvable:$false] %s2004_s30 }
 0x216   : > { %p2002_p5 = pnand %p2001_p3, %p2789_p9  ;;  %s2006_s19 = scalar_lea.vmem %s2005_s30, 4096 }
 0x217   : > { %p2007_p11 = scmp.lt.s32.totalorder %s2686_s6, %s2005_s30  ;;  %p2008_p0 = scmp.lt.s32.totalorder %s2006_s19, %s2000_s1 }
 0x218   : > { %s2684_s29 = scalar_lea.hbm %s2790_s13, %s1518_s7  ;;  %p2003_p7 = pneg %p2002_p5 }
 0x219   : > { %p2009_p13 = por %p2008_p0, %p2007_p11 }
 0x21b   : > { %p2010_p8 = pnand %p2009_p13, %p2003_p7 }
 0x21d   : > { %2013 = shalt.err (!%p2010_p8)
}
 0x21e   : > { %s2014_s25 = scalar_lea.hbm %s2684_s29, 2048  ;;  %s2018_s9 = scalar_lea.hbm %s2790_s13, 4096 }
 0x21f   : > { %p2015_p10 = scmp.ne.s32.totalorder %s2684_s29, %s2014_s25  ;;  %p2019_p4 = scmp.lt.u32.totalorder %s2684_s29, %s2790_s13 }
 0x220   : > { %p2020_p12 = scmp.lt.u32.totalorder %s2018_s9, %s2014_s25  ;;  %p2022_p3 = scmp.lt.u32.totalorder %s2014_s25, %s2684_s29 }
 0x221   : > { %p2016_p1 = pnand %p2015_p10, %p2789_p9 }
 0x222   : > { %p2021_p6 = por %p2020_p12, %p2019_p4 }
 0x223   : > { %p2017_p2 = pneg %p2016_p1 }
 0x224   : > { %p2023_p5 = por %p2022_p3, %p2021_p6 }
 0x226   : > { %p2024_p7 = pnand %p2023_p5, %p2017_p2 }
 0x228   : > { %2027 = shalt.err (!%p2024_p7)
}
 0x229   : > { %1594 = dma.vmem_to_hbm [thread:$0]  (%p2789_p9), %s2686_s6, 2048, %s2684_s29, %s1247_s14, %s2089_s5, %s2089_s5, %s2090_s26  }
 0x22a PF: > { %s2791_s24 = sld [smem:[#allocation18_spill]]  ;;  %s2792_s28 = sld [smem:[#allocation22_spill]] }
 0x22b   : > { %s2793_s15 = sld [smem:[#allocation19_spill]] }
 0x230   : > { %s1296_s27 = sand.u32 1, %s2791_s24   ;;  %p2794_p11 = scmp.ne.s32.totalorder %s2792_s28, 0 }
 0x231   : > { %p2795_p0 = scmp.ge.s32.totalorder %s2793_s15, 2  ;;  %s1297_s21 = scalar_lea.sflag [#allocation4], %s1296_s27 }
 0x233   : > { %p1613_p13 = pnand %p2795_p0, %p2794_p11 }
 0x235   : > { %2057 = dma.done.wait (!%p1613_p13), %s1297_s21, 2048  }
 0x236   : > { %2059 = vsyncadd (!%p1613_p13), %s1297_s21, 4294965248  ;;  %s1306_s12 = scalar_lea.sflag [#allocation12], %s1296_s27 }
 0x237   : > { %2061 = dma.done.wait (!%p1613_p13), %s1306_s12, 2048  }
 0x238   : > { %2063 = vsyncadd (!%p1613_p13), %s1306_s12, 4294965248  ;;  %s2796_s24 = sld [smem:[#allocation20_spill]]  ;;  %s2797_s17 = sld [smem:[#allocation21_spill]] }
 0x239   : > { %s2798_s21 = smov %s2070_s22  ;;  %s2799_s22 = smov %s2074_s23 }
 0x23e   : > { %p27_p9 = scmp.ge.s32.totalorder %s2796_s24, 4   ;;  %s2800_s23 = smov %s2797_s17 }
 0x240   :  { %29 = sbr.rel (!%p27_p9) target bundleno = 14 (0xe), region = 130 }
 0x247   :  { %1311 = vsyncpa [#allocation3], 1 }
 0x248   :  { %1313 = vsyncpa [#allocation3 + $0x1], 1 }
 0x249   :  { %1314 = vsyncpa [#allocation6], 1 }
 0x24a   :  { %1316 = vsyncpa [#allocation6 + $0x1], 1 }
 0x24b   :  { %1317 = vsyncpa [#allocation9], 1 }
 0x24c   :  { %1318 = vsyncpa [#allocation4], 1 }
 0x24d   :  { %1320 = vsyncpa [#allocation4 + $0x1], 1 }
 0x24e   :  { %1321 = vsyncpa [#allocation12], 1 }
 0x24f   :  { %1323 = vsyncpa [#allocation12 + $0x1], 1 }

</bundles_post_ra>
